<compile_context>
chip_gen: v7x
topology: tpu7x:2x2x1
jax: 0.10.0
libtpu: 0.0.40
codegen_flags: <defaults>
</compile_context>

<pallas_src>
import jax
import jax.numpy as jnp
from jax.experimental import pallas as pl
from jax.experimental.pallas import tpu as pltpu


# ----------------------------------------------------------------------------
# Fused Pallas kernel (one batch element per grid step)
# ----------------------------------------------------------------------------

def ppsa_kernel(x_ref,                       # (HW, C)   activation
                w_ch_wq_ref,                 # (C, 1)    ch_wq 1x1 conv (bias dropped: softmax shift-invariant)
                w_ch_wv_ref, b_ch_wv_ref,    # (C, C2), (1, C2)
                w_ch_wz_ref, b_ch_wz_ref,    # (C2, C), (1, C)
                ln_g_ref, ln_b_ref,          # (1, C),  (1, C)
                w_sp_wq_ref, b_sp_wq_ref,    # (C, C2), (1, C2)
                w_sp_wv_ref, b_sp_wv_ref,    # (C, C2), (1, C2)
                o_ref):                      # (HW, C)
    x = x_ref[...]                                           # native dtype
    xf = x.astype(jnp.float32)                               # no-op for f32 in

    # ------------------------- spatial-only branch -------------------------
    # Pool BEFORE the 1x1 conv (exact under linearity): (1,C) mean of x, then
    # a tiny (1,C)x(C,C2) matmul instead of an (HW,C)x(C,C2) one.
    mean_x = jnp.mean(xf, axis=0, keepdims=True)             # (1, C)
    sp_q = jnp.dot(mean_x, w_sp_wq_ref[...].astype(jnp.float32),
                   preferred_element_type=jnp.float32)
    sp_q = sp_q + b_sp_wq_ref[...].astype(jnp.float32)       # (1, C2)
    sp_q = sp_q - jnp.max(sp_q, axis=-1, keepdims=True)
    sp_e = jnp.exp(sp_q)
    sp_q = sp_e / jnp.sum(sp_e, axis=-1, keepdims=True)      # (1, C2) softmax

    # Fold the softmaxed query into the value weight:
    #   v = W_sp_wv @ sp_q^T        -> (C, 1)
    #   sp_wz = x @ v + b_sp_wv.sp_q
    v = jax.lax.dot_general(w_sp_wv_ref[...].astype(jnp.float32), sp_q,
                            dimension_numbers=(((1,), (1,)), ((), ())),
                            preferred_element_type=jnp.float32)      # (C, 1)
    b_dot = jnp.sum(b_sp_wv_ref[...].astype(jnp.float32) * sp_q,
                    axis=-1, keepdims=True)                          # (1, 1)
    sp_wz = jnp.dot(x, v.astype(x.dtype),
                    preferred_element_type=jnp.float32) + b_dot      # (HW, 1)
    sp_weight = jax.nn.sigmoid(sp_wz)                                # (HW, 1)

    # ------------------------- channel-only branch -------------------------
    # Per-pixel scalar query on the MXU (bias omitted: softmax over HW is
    # shift-invariant, so it is exactly a no-op).
    ch_wq = jnp.dot(x, w_ch_wq_ref[...].astype(x.dtype),
                    preferred_element_type=jnp.float32)              # (HW, 1)
    ch_wq = ch_wq - jnp.max(ch_wq, axis=0, keepdims=True)
    ch_e = jnp.exp(ch_wq)
    ch_attn = ch_e / jnp.sum(ch_e, axis=0, keepdims=True)            # (HW, 1)

    # Attention-pool x first (broadcast-mul + axis-0 reduce), then the 1x1
    # convs operate on a single (1, C) row — no (HW, C/2) temporary.
    pooled = jnp.sum(xf * ch_attn, axis=0, keepdims=True)            # (1, C)
    ch_wz = jnp.dot(pooled, w_ch_wv_ref[...].astype(jnp.float32),
                    preferred_element_type=jnp.float32)
    ch_wz = ch_wz + b_ch_wv_ref[...].astype(jnp.float32)             # (1, C2)
    z = jnp.dot(ch_wz, w_ch_wz_ref[...].astype(jnp.float32),
                preferred_element_type=jnp.float32)
    z = z + b_ch_wz_ref[...].astype(jnp.float32)                     # (1, C)

    # LayerNorm over channels (eps = 1e-5, PyTorch default), then sigmoid.
    mu = jnp.mean(z, axis=-1, keepdims=True)
    var = jnp.mean((z - mu) ** 2, axis=-1, keepdims=True)
    zn = (z - mu) * jax.lax.rsqrt(var + 1e-5)
    zn = zn * ln_g_ref[...].astype(jnp.float32) + ln_b_ref[...].astype(jnp.float32)
    ch_weight = jax.nn.sigmoid(zn)                                   # (1, C)

    # --------------------------- fused gating ------------------------------
    # channel_out + spatial_out == x * (ch_weight + sp_weight)
    gate = ch_weight + sp_weight                                     # (HW, C)
    o_ref[...] = (xf * gate).astype(o_ref.dtype)


# ----------------------------------------------------------------------------
# Wrapper: NHWC in / NHWC out, no transposes, single fused pallas_call
# ----------------------------------------------------------------------------

@jax.jit
def ppsa_forward(x_nhwc, p):
    B, H, W, C = x_nhwc.shape
    C2 = C // 2
    HW = H * W

    # Free metadata reshape (NHWC is contiguous): channels stay on lanes.
    x = x_nhwc.reshape(B, HW, C)

    const = lambda b: (0, 0)   # weights are grid-invariant

    out = pl.pallas_call(
        ppsa_kernel,
        out_shape=jax.ShapeDtypeStruct((B, HW, C), x.dtype),
        grid=(B,),
        in_specs=[
            pl.BlockSpec((None, HW, C), lambda b: (b, 0, 0)),   # x  (batch squeezed)
            pl.BlockSpec((C, 1), const),                        # w_ch_wq
            pl.BlockSpec((C, C2), const),                       # w_ch_wv
            pl.BlockSpec((1, C2), const),                       # b_ch_wv
            pl.BlockSpec((C2, C), const),                       # w_ch_wz
            pl.BlockSpec((1, C), const),                        # b_ch_wz
            pl.BlockSpec((1, C), const),                        # ln_gamma
            pl.BlockSpec((1, C), const),                        # ln_beta
            pl.BlockSpec((C, C2), const),                       # w_sp_wq
            pl.BlockSpec((1, C2), const),                       # b_sp_wq
            pl.BlockSpec((C, C2), const),                       # w_sp_wv
            pl.BlockSpec((1, C2), const),                       # b_sp_wv
        ],
        out_specs=pl.BlockSpec((None, HW, C), lambda b: (b, 0, 0)),
        compiler_params=pltpu.CompilerParams(
            dimension_semantics=("parallel",)),
    )(x,
      p["w_ch_wq"],
      p["w_ch_wv"], p["b_ch_wv"].reshape(1, C2),
      p["w_ch_wz"], p["b_ch_wz"].reshape(1, C),
      p["ln_g"].reshape(1, C), p["ln_b"].reshape(1, C),
      p["w_sp_wq"], p["b_sp_wq"].reshape(1, C2),
      p["w_sp_wv"], p["b_sp_wv"].reshape(1, C2))

    return out.reshape(B, H, W, C)


# ----------------------------------------------------------------------------
# Pure-JAX reference (mirrors the PyTorch NCHW forward exactly)
# ----------------------------------------------------------------------------

def ppsa_ref(x_nchw, p):
    b, c, h, w = x_nchw.shape
    c2 = c // 2
    hw = h * w

    def conv1x1(x, w_io, bias):  # w_io: (Cin, Cout)
        return jnp.einsum("bihw,io->bohw", x, w_io) + bias.reshape(1, -1, 1, 1)

    # channel-only branch
    ch_wv = conv1x1(x_nchw, p["w_ch_wv"], p["b_ch_wv"]).reshape(b, c2, hw)
    ch_wq = (jnp.einsum("bihw,i->bhw", x_nchw, p["w_ch_wq"][:, 0])
             + p["b_ch_wq"][0]).reshape(b, hw, 1)
    ch_wq = jax.nn.softmax(ch_wq, axis=1)
    ch_wz = jnp.einsum("bkn,bno->bk", ch_wv, ch_wq)               # (b, c2)
    z = ch_wz @ p["w_ch_wz"] + p["b_ch_wz"]                       # (b, c)
    mu = jnp.mean(z, axis=-1, keepdims=True)
    var = jnp.mean((z - mu) ** 2, axis=-1, keepdims=True)
    zn = (z - mu) * jax.lax.rsqrt(var + 1e-5) * p["ln_g"] + p["ln_b"]
    ch_weight = jax.nn.sigmoid(zn).reshape(b, c, 1, 1)
    channel_out = ch_weight * x_nchw

    # spatial-only branch
    sp_wv = conv1x1(x_nchw, p["w_sp_wv"], p["b_sp_wv"]).reshape(b, c2, hw)
    sp_wq = conv1x1(x_nchw, p["w_sp_wq"], p["b_sp_wq"])
    sp_wq = jnp.mean(sp_wq, axis=(2, 3))                          # (b, c2)
    sp_wq = jax.nn.softmax(sp_wq, axis=-1)
    sp_wz = jnp.einsum("bk,bkn->bn", sp_wq, sp_wv)                # (b, hw)
    sp_weight = jax.nn.sigmoid(sp_wz).reshape(b, 1, h, w)
    spatial_out = sp_weight * x_nchw

    return spatial_out + channel_out


# ----------------------------------------------------------------------------
# Deterministic synthetic parameters (shapes follow the PyTorch module;
# all 1x1 conv weights stored as (Cin, Cout))
# ----------------------------------------------------------------------------

def init_params(key, c):
    c2 = c // 2
    ks = jax.random.split(key, 12)

    def w(k, cin, cout):
        s = 1.0 / cin ** 0.5
        return jax.random.uniform(k, (cin, cout), jnp.float32, -s, s)

    def bvec(k, cout, fan_in):
        s = 1.0 / fan_in ** 0.5
        return jax.random.uniform(k, (cout,), jnp.float32, -s, s)

    p = {}
    p["w_ch_wv"] = w(ks[0], c, c2)
    p["b_ch_wv"] = bvec(ks[1], c2, c)
    p["w_ch_wq"] = w(ks[2], c, 1)                 # (C, 1) column
    p["b_ch_wq"] = bvec(ks[3], 1, c)              # used only by the reference
    p["w_ch_wz"] = w(ks[4], c2, c)
    p["b_ch_wz"] = bvec(ks[5], c, c2)
    # LayerNorm affine (PyTorch default is ones/zeros; perturb to exercise it)
    p["ln_g"] = 1.0 + 0.1 * jax.random.normal(ks[6], (c,), jnp.float32)
    p["ln_b"] = 0.1 * jax.random.normal(ks[7], (c,), jnp.float32)
    p["w_sp_wv"] = w(ks[8], c, c2)
    p["b_sp_wv"] = bvec(ks[9], c2, c)
    p["w_sp_wq"] = w(ks[10], c, c2)
    p["b_sp_wq"] = bvec(ks[11], c2, c)
    return p


if __name__ == "__main__":
    key = jax.random.PRNGKey(0)
    kx, kp = jax.random.split(key)

    # Small shapes; C = 128 keeps the channel (lane) axis dense on the TPU.
    B, C, H, W = 2, 128, 16, 16
    x_nchw = jax.random.normal(kx, (B, C, H, W), jnp.float32)   # PyTorch layout
    params = init_params(kp, C)

    # The kernel is NHWC-native (no transposes inside the wrapper); convert
    # once here only to build the test input / check against the NCHW math.
    x_nhwc = jnp.transpose(x_nchw, (0, 2, 3, 1))

    out_nhwc = jax.block_until_ready(ppsa_forward(x_nhwc, params))
    ref_nhwc = jnp.transpose(ppsa_ref(x_nchw, params), (0, 2, 3, 1))

    assert out_nhwc.shape == (B, H, W, C), out_nhwc.shape
    max_err = float(jnp.max(jnp.abs(out_nhwc - ref_nhwc)))
    assert jnp.allclose(out_nhwc, ref_nhwc, atol=1e-4, rtol=1e-4), max_err

    print("KERNEL_OK")
</pallas_src>

<mosaic_0001>
module attributes {stable_mosaic.version = 11 : i64} {
  func.func @ppsa_kernel(%arg0: i32, %arg1: memref<1x256x128xf32, #tpu.memory_space<vmem>>, %arg2: memref<128x1xf32, #tpu.memory_space<vmem>>, %arg3: memref<128x64xf32, #tpu.memory_space<vmem>>, %arg4: memref<1x64xf32, #tpu.memory_space<vmem>>, %arg5: memref<64x128xf32, #tpu.memory_space<vmem>>, %arg6: memref<1x128xf32, #tpu.memory_space<vmem>>, %arg7: memref<1x128xf32, #tpu.memory_space<vmem>>, %arg8: memref<1x128xf32, #tpu.memory_space<vmem>>, %arg9: memref<128x64xf32, #tpu.memory_space<vmem>>, %arg10: memref<1x64xf32, #tpu.memory_space<vmem>>, %arg11: memref<128x64xf32, #tpu.memory_space<vmem>>, %arg12: memref<1x64xf32, #tpu.memory_space<vmem>>, %arg13: memref<1x256x128xf32, #tpu.memory_space<vmem>>) attributes {dimension_semantics = [#tpu.dimension_semantics<parallel>], iteration_bounds = array<i64: 2>, scalar_prefetch = 0 : i64, scratch_operands = 0 : i64, tpu.core_type = #tpu.core_type<tc>, window_params = [{transform_indices = @transform_0, window_bounds = array<i64: 1, 256, 128>}, {pipeline_mode = #tpu.pipeline_mode<synchronous>, transform_indices = @transform_1, window_bounds = array<i64: 128, 1>}, {pipeline_mode = #tpu.pipeline_mode<synchronous>, transform_indices = @transform_2, window_bounds = array<i64: 128, 64>}, {pipeline_mode = #tpu.pipeline_mode<synchronous>, transform_indices = @transform_3, window_bounds = array<i64: 1, 64>}, {pipeline_mode = #tpu.pipeline_mode<synchronous>, transform_indices = @transform_4, window_bounds = array<i64: 64, 128>}, {pipeline_mode = #tpu.pipeline_mode<synchronous>, transform_indices = @transform_5, window_bounds = array<i64: 1, 128>}, {pipeline_mode = #tpu.pipeline_mode<synchronous>, transform_indices = @transform_6, window_bounds = array<i64: 1, 128>}, {pipeline_mode = #tpu.pipeline_mode<synchronous>, transform_indices = @transform_7, window_bounds = array<i64: 1, 128>}, {pipeline_mode = #tpu.pipeline_mode<synchronous>, transform_indices = @transform_8, window_bounds = array<i64: 128, 64>}, {pipeline_mode = #tpu.pipeline_mode<synchronous>, transform_indices = @transform_9, window_bounds = array<i64: 1, 64>}, {pipeline_mode = #tpu.pipeline_mode<synchronous>, transform_indices = @transform_10, window_bounds = array<i64: 128, 64>}, {pipeline_mode = #tpu.pipeline_mode<synchronous>, transform_indices = @transform_11, window_bounds = array<i64: 1, 64>}, {transform_indices = @transform_12, window_bounds = array<i64: 1, 256, 128>}]} {
    %c0 = arith.constant 0 : index
    %c0_0 = arith.constant 0 : index
    %c0_1 = arith.constant 0 : index
    %0 = vector.load %arg1[%c0, %c0_0, %c0_1] : memref<1x256x128xf32, #tpu.memory_space<vmem>>, vector<1x256x128xf32>
    %1 = vector.shape_cast %0 : vector<1x256x128xf32> to vector<256x128xf32>
    %cst = arith.constant dense<0.000000e+00> : vector<128xf32>
    %2 = vector.multi_reduction <add>, %1, %cst [0] : vector<256x128xf32> to vector<128xf32>
    %3 = vector.shape_cast %2 : vector<128xf32> to vector<1x128xf32>
    %cst_2 = arith.constant 2.560000e+02 : f32
    %4 = vector.broadcast %cst_2 : f32 to vector<1x128xf32>
    %5 = arith.divf %3, %4 : vector<1x128xf32>
    %c0_3 = arith.constant 0 : index
    %c0_4 = arith.constant 0 : index
    %6 = vector.load %arg9[%c0_3, %c0_4] : memref<128x64xf32, #tpu.memory_space<vmem>>, vector<128x64xf32>
    %cst_5 = arith.constant dense<0.000000e+00> : vector<1x64xf32>
    %7 = tpu.matmul %5, %6, %cst_5 {dimension_numbers = #tpu.dot_dimension_numbers<[1], [0], [0], [1], [0, 0, 1, 1], [], []>} : vector<1x128xf32>, vector<128x64xf32>, vector<1x64xf32> -> vector<1x64xf32>
    %c0_6 = arith.constant 0 : index
    %c0_7 = arith.constant 0 : index
    %8 = vector.load %arg10[%c0_6, %c0_7] : memref<1x64xf32, #tpu.memory_space<vmem>>, vector<1x64xf32>
    %9 = arith.addf %7, %8 : vector<1x64xf32>
    %cst_8 = arith.constant dense<0xFF800000> : vector<1xf32>
    %10 = vector.multi_reduction <maximumf>, %9, %cst_8 [1] : vector<1x64xf32> to vector<1xf32>
    %11 = vector.shape_cast %10 : vector<1xf32> to vector<1x1xf32>
    %12 = vector.broadcast %11 : vector<1x1xf32> to vector<1x64xf32>
    %13 = arith.subf %9, %12 : vector<1x64xf32>
    %14 = math.exp %13 : vector<1x64xf32>
    %cst_9 = arith.constant dense<0.000000e+00> : vector<1xf32>
    %15 = vector.multi_reduction <add>, %14, %cst_9 [1] : vector<1x64xf32> to vector<1xf32>
    %16 = vector.shape_cast %15 : vector<1xf32> to vector<1x1xf32>
    %17 = vector.broadcast %16 : vector<1x1xf32> to vector<1x64xf32>
    %18 = arith.divf %14, %17 : vector<1x64xf32>
    %c0_10 = arith.constant 0 : index
    %c0_11 = arith.constant 0 : index
    %19 = vector.load %arg11[%c0_10, %c0_11] : memref<128x64xf32, #tpu.memory_space<vmem>>, vector<128x64xf32>
    %cst_12 = arith.constant dense<0.000000e+00> : vector<128x1xf32>
    %20 = tpu.matmul %19, %18, %cst_12 {dimension_numbers = #tpu.dot_dimension_numbers<[1], [1], [0], [0], [0, 0, 1, 0], [], []>} : vector<128x64xf32>, vector<1x64xf32>, vector<128x1xf32> -> vector<128x1xf32>
    %c0_13 = arith.constant 0 : index
    %c0_14 = arith.constant 0 : index
    %21 = vector.load %arg12[%c0_13, %c0_14] : memref<1x64xf32, #tpu.memory_space<vmem>>, vector<1x64xf32>
    %22 = arith.mulf %21, %18 : vector<1x64xf32>
    %cst_15 = arith.constant dense<0.000000e+00> : vector<1xf32>
    %23 = vector.multi_reduction <add>, %22, %cst_15 [1] : vector<1x64xf32> to vector<1xf32>
    %24 = vector.shape_cast %23 : vector<1xf32> to vector<1x1xf32>
    %cst_16 = arith.constant dense<0.000000e+00> : vector<256x1xf32>
    %25 = tpu.matmul %1, %20, %cst_16 {dimension_numbers = #tpu.dot_dimension_numbers<[1], [0], [0], [1], [0, 0, 1, 1], [], []>} : vector<256x128xf32>, vector<128x1xf32>, vector<256x1xf32> -> vector<256x1xf32>
    %26 = vector.broadcast %24 : vector<1x1xf32> to vector<256x1xf32>
    %27 = arith.addf %25, %26 : vector<256x1xf32>
    %28 = arith.negf %27 : vector<256x1xf32>
    %29 = math.exp %28 : vector<256x1xf32>
    %cst_17 = arith.constant 1.000000e+00 : f32
    %30 = vector.broadcast %cst_17 : f32 to vector<256x1xf32>
    %31 = arith.addf %30, %29 : vector<256x1xf32>
    %32 = arith.divf %30, %31 : vector<256x1xf32>
    %c0_18 = arith.constant 0 : index
    %c0_19 = arith.constant 0 : index
    %33 = vector.load %arg2[%c0_18, %c0_19] : memref<128x1xf32, #tpu.memory_space<vmem>>, vector<128x1xf32>
    %cst_20 = arith.constant dense<0.000000e+00> : vector<256x1xf32>
    %34 = tpu.matmul %1, %33, %cst_20 {dimension_numbers = #tpu.dot_dimension_numbers<[1], [0], [0], [1], [0, 0, 1, 1], [], []>} : vector<256x128xf32>, vector<128x1xf32>, vector<256x1xf32> -> vector<256x1xf32>
    %cst_21 = arith.constant dense<0xFF800000> : vector<1xf32>
    %35 = vector.multi_reduction <maximumf>, %34, %cst_21 [0] : vector<256x1xf32> to vector<1xf32>
    %36 = vector.shape_cast %35 : vector<1xf32> to vector<1x1xf32>
    %37 = vector.broadcast %36 : vector<1x1xf32> to vector<256x1xf32>
    %38 = arith.subf %34, %37 : vector<256x1xf32>
    %39 = math.exp %38 : vector<256x1xf32>
    %cst_22 = arith.constant dense<0.000000e+00> : vector<1xf32>
    %40 = vector.multi_reduction <add>, %39, %cst_22 [0] : vector<256x1xf32> to vector<1xf32>
    %41 = vector.shape_cast %40 : vector<1xf32> to vector<1x1xf32>
    %42 = vector.broadcast %41 : vector<1x1xf32> to vector<256x1xf32>
    %43 = arith.divf %39, %42 : vector<256x1xf32>
    %44 = vector.broadcast %43 : vector<256x1xf32> to vector<256x128xf32>
    %45 = arith.mulf %1, %44 : vector<256x128xf32>
    %cst_23 = arith.constant dense<0.000000e+00> : vector<128xf32>
    %46 = vector.multi_reduction <add>, %45, %cst_23 [0] : vector<256x128xf32> to vector<128xf32>
    %47 = vector.shape_cast %46 : vector<128xf32> to vector<1x128xf32>
    %c0_24 = arith.constant 0 : index
    %c0_25 = arith.constant 0 : index
    %48 = vector.load %arg3[%c0_24, %c0_25] : memref<128x64xf32, #tpu.memory_space<vmem>>, vector<128x64xf32>
    %cst_26 = arith.constant dense<0.000000e+00> : vector<1x64xf32>
    %49 = tpu.matmul %47, %48, %cst_26 {dimension_numbers = #tpu.dot_dimension_numbers<[1], [0], [0], [1], [0, 0, 1, 1], [], []>} : vector<1x128xf32>, vector<128x64xf32>, vector<1x64xf32> -> vector<1x64xf32>
    %c0_27 = arith.constant 0 : index
    %c0_28 = arith.constant 0 : index
    %50 = vector.load %arg4[%c0_27, %c0_28] : memref<1x64xf32, #tpu.memory_space<vmem>>, vector<1x64xf32>
    %51 = arith.addf %49, %50 : vector<1x64xf32>
    %c0_29 = arith.constant 0 : index
    %c0_30 = arith.constant 0 : index
    %52 = vector.load %arg5[%c0_29, %c0_30] : memref<64x128xf32, #tpu.memory_space<vmem>>, vector<64x128xf32>
    %cst_31 = arith.constant dense<0.000000e+00> : vector<1x128xf32>
    %53 = tpu.matmul %51, %52, %cst_31 {dimension_numbers = #tpu.dot_dimension_numbers<[1], [0], [0], [1], [0, 0, 1, 1], [], []>} : vector<1x64xf32>, vector<64x128xf32>, vector<1x128xf32> -> vector<1x128xf32>
    %c0_32 = arith.constant 0 : index
    %c0_33 = arith.constant 0 : index
    %54 = vector.load %arg6[%c0_32, %c0_33] : memref<1x128xf32, #tpu.memory_space<vmem>>, vector<1x128xf32>
    %55 = arith.addf %53, %54 : vector<1x128xf32>
    %cst_34 = arith.constant dense<0.000000e+00> : vector<1xf32>
    %56 = vector.multi_reduction <add>, %55, %cst_34 [1] : vector<1x128xf32> to vector<1xf32>
    %57 = vector.shape_cast %56 : vector<1xf32> to vector<1x1xf32>
    %cst_35 = arith.constant 1.280000e+02 : f32
    %58 = vector.broadcast %cst_35 : f32 to vector<1x1xf32>
    %59 = arith.divf %57, %58 : vector<1x1xf32>
    %60 = vector.broadcast %59 : vector<1x1xf32> to vector<1x128xf32>
    %61 = arith.subf %55, %60 : vector<1x128xf32>
    %62 = arith.mulf %61, %61 : vector<1x128xf32>
    %cst_36 = arith.constant dense<0.000000e+00> : vector<1xf32>
    %63 = vector.multi_reduction <add>, %62, %cst_36 [1] : vector<1x128xf32> to vector<1xf32>
    %64 = vector.shape_cast %63 : vector<1xf32> to vector<1x1xf32>
    %cst_37 = arith.constant 1.280000e+02 : f32
    %65 = vector.broadcast %cst_37 : f32 to vector<1x1xf32>
    %66 = arith.divf %64, %65 : vector<1x1xf32>
    %67 = vector.broadcast %59 : vector<1x1xf32> to vector<1x128xf32>
    %68 = arith.subf %55, %67 : vector<1x128xf32>
    %cst_38 = arith.constant 9.99999974E-6 : f32
    %69 = vector.broadcast %cst_38 : f32 to vector<1x1xf32>
    %70 = arith.addf %66, %69 : vector<1x1xf32>
    %71 = math.rsqrt %70 : vector<1x1xf32>
    %72 = vector.broadcast %71 : vector<1x1xf32> to vector<1x128xf32>
    %73 = arith.mulf %68, %72 : vector<1x128xf32>
    %c0_39 = arith.constant 0 : index
    %c0_40 = arith.constant 0 : index
    %74 = vector.load %arg7[%c0_39, %c0_40] : memref<1x128xf32, #tpu.memory_space<vmem>>, vector<1x128xf32>
    %75 = arith.mulf %73, %74 : vector<1x128xf32>
    %c0_41 = arith.constant 0 : index
    %c0_42 = arith.constant 0 : index
    %76 = vector.load %arg8[%c0_41, %c0_42] : memref<1x128xf32, #tpu.memory_space<vmem>>, vector<1x128xf32>
    %77 = arith.addf %75, %76 : vector<1x128xf32>
    %78 = arith.negf %77 : vector<1x128xf32>
    %79 = math.exp %78 : vector<1x128xf32>
    %cst_43 = arith.constant 1.000000e+00 : f32
    %80 = vector.broadcast %cst_43 : f32 to vector<1x128xf32>
    %81 = arith.addf %80, %79 : vector<1x128xf32>
    %82 = arith.divf %80, %81 : vector<1x128xf32>
    %83 = vector.broadcast %82 : vector<1x128xf32> to vector<256x128xf32>
    %84 = vector.broadcast %32 : vector<256x1xf32> to vector<256x128xf32>
    %85 = arith.addf %83, %84 : vector<256x128xf32>
    %86 = arith.mulf %1, %85 : vector<256x128xf32>
    %c0_44 = arith.constant 0 : index
    %c0_45 = arith.constant 0 : index
    %c0_46 = arith.constant 0 : index
    %87 = vector.load %arg13[%c0_44, %c0_45, %c0_46] : memref<1x256x128xf32, #tpu.memory_space<vmem>>, vector<1x256x128xf32>
    %88 = vector.shape_cast %87 : vector<1x256x128xf32> to vector<256x128xf32>
    %89 = vector.shape_cast %86 : vector<256x128xf32> to vector<1x256x128xf32>
    tpu.vector_store %arg13[%c0_44, %c0_45, %c0_46], %89 {strides = array<i32>} : memref<1x256x128xf32, #tpu.memory_space<vmem>>, vector<1x256x128xf32>,
    return
  }
  func.func @transform_0(%arg0: i32) -> (i32, i32, i32) {
    %c0_i32 = arith.constant 0 : i32
    %c0_i32_0 = arith.constant 0 : i32
    %c0_i32_1 = arith.constant 0 : i32
    return %arg0, %c0_i32, %c0_i32_0 : i32, i32, i32
  }
  func.func @transform_1(%arg0: i32) -> (i32, i32) {
    %c0_i32 = arith.constant 0 : i32
    %c0_i32_0 = arith.constant 0 : i32
    %c0_i32_1 = arith.constant 0 : i32
    return %c0_i32, %c0_i32_0 : i32, i32
  }
  func.func @transform_2(%arg0: i32) -> (i32, i32) {
    %c0_i32 = arith.constant 0 : i32
    %c0_i32_0 = arith.constant 0 : i32
    %c0_i32_1 = arith.constant 0 : i32
    return %c0_i32, %c0_i32_0 : i32, i32
  }
  func.func @transform_3(%arg0: i32) -> (i32, i32) {
    %c0_i32 = arith.constant 0 : i32
    %c0_i32_0 = arith.constant 0 : i32
    %c0_i32_1 = arith.constant 0 : i32
    return %c0_i32, %c0_i32_0 : i32, i32
  }
  func.func @transform_4(%arg0: i32) -> (i32, i32) {
    %c0_i32 = arith.constant 0 : i32
    %c0_i32_0 = arith.constant 0 : i32
    %c0_i32_1 = arith.constant 0 : i32
    return %c0_i32, %c0_i32_0 : i32, i32
  }
  func.func @transform_5(%arg0: i32) -> (i32, i32) {
    %c0_i32 = arith.constant 0 : i32
    %c0_i32_0 = arith.constant 0 : i32
    %c0_i32_1 = arith.constant 0 : i32
    return %c0_i32, %c0_i32_0 : i32, i32
  }
  func.func @transform_6(%arg0: i32) -> (i32, i32) {
    %c0_i32 = arith.constant 0 : i32
    %c0_i32_0 = arith.constant 0 : i32
    %c0_i32_1 = arith.constant 0 : i32
    return %c0_i32, %c0_i32_0 : i32, i32
  }
  func.func @transform_7(%arg0: i32) -> (i32, i32) {
    %c0_i32 = arith.constant 0 : i32
    %c0_i32_0 = arith.constant 0 : i32
    %c0_i32_1 = arith.constant 0 : i32
    return %c0_i32, %c0_i32_0 : i32, i32
  }
  func.func @transform_8(%arg0: i32) -> (i32, i32) {
    %c0_i32 = arith.constant 0 : i32
    %c0_i32_0 = arith.constant 0 : i32
    %c0_i32_1 = arith.constant 0 : i32
    return %c0_i32, %c0_i32_0 : i32, i32
  }
  func.func @transform_9(%arg0: i32) -> (i32, i32) {
    %c0_i32 = arith.constant 0 : i32
    %c0_i32_0 = arith.constant 0 : i32
    %c0_i32_1 = arith.constant 0 : i32
    return %c0_i32, %c0_i32_0 : i32, i32
  }
  func.func @transform_10(%arg0: i32) -> (i32, i32) {
    %c0_i32 = arith.constant 0 : i32
    %c0_i32_0 = arith.constant 0 : i32
    %c0_i32_1 = arith.constant 0 : i32
    return %c0_i32, %c0_i32_0 : i32, i32
  }
  func.func @transform_11(%arg0: i32) -> (i32, i32) {
    %c0_i32 = arith.constant 0 : i32
    %c0_i32_0 = arith.constant 0 : i32
    %c0_i32_1 = arith.constant 0 : i32
    return %c0_i32, %c0_i32_0 : i32, i32
  }
  func.func @transform_12(%arg0: i32) -> (i32, i32, i32) {
    %c0_i32 = arith.constant 0 : i32
    %c0_i32_0 = arith.constant 0 : i32
    %c0_i32_1 = arith.constant 0 : i32
    return %arg0, %c0_i32, %c0_i32_0 : i32, i32, i32
  }
}

</mosaic_0001>

<bundles_post_ra>
// kernel: ppsa_forward.1
= control target key start
LH: loop header
LB: loop body
LE: loop exit
PB: predicated region body
PF: predicated region fallthrough
CT: control target
= control target key end

     0   :  { %s4876_s0 = inlined_call_operand.vmem [shape: f32[2,256,128], index: 0, kind: input, shape index: {}]   ;;  %s4877_s1 = inlined_call_operand.vmem [shape: f32[128,1], index: 1, kind: input, shape index: {}]   ;;  %s4878_s2 = inlined_call_operand.vmem [shape: f32[128,64], index: 2, kind: input, shape index: {}]   ;;  %s4879_s3 = inlined_call_operand.vmem [shape: f32[1,64], index: 3, kind: input, shape index: {}]   ;;  %s4880_s4 = inlined_call_operand.hbm [shape: f32[64,128], index: 4, kind: input, shape index: {}]   ;;  %s4881_s5 = inlined_call_operand.vmem [shape: f32[1,128], index: 5, kind: input, shape index: {}]   ;;  %s4882_s6 = inlined_call_operand.vmem [shape: f32[1,128], index: 6, kind: input, shape index: {}]   ;;  %s4883_s7 = inlined_call_operand.vmem [shape: f32[1,128], index: 7, kind: input, shape index: {}]   ;;  %s4884_s8 = inlined_call_operand.vmem [shape: f32[128,64], index: 8, kind: input, shape index: {}]   ;;  %s4885_s9 = inlined_call_operand.vmem [shape: f32[1,64], index: 9, kind: input, shape index: {}]   ;;  %s4886_s10 = inlined_call_operand.vmem [shape: f32[128,64], index: 10, kind: input, shape index: {}]   ;;  %s4887_s11 = inlined_call_operand.vmem [shape: f32[1,64], index: 11, kind: input, shape index: {}]   ;;  %s4888_s12 = inlined_call_operand.hbm [shape: f32[2,256,128], index: 12, kind: output, shape index: {}]  }
   0x1   :  { %4893 = sst [smem:[#allocation10_spill]] %s4880_s4 }
   0x2   :  { %17 = vsyncpa [#allocation3], 0 }
   0x3   :  { %18 = vsyncpa [#allocation4], 0 }
   0x4   :  { %20 = vsyncpa [#allocation4 + $0x1], 0  ;;  %s3444_s21 = smov 0   ;;  %s3446_s22 = smov 0  }
   0x5   :  { %s3448_s23 = smov 0   ;;  %s3450_s24 = smov 0  }
   0x6 LB: > { %4894 = sst [smem:[#allocation8_spill]] %s3363_s23  ;;  %s3465_s25 = sadd.s32 4294967295, %s3367_s24   ;;  %s3367_s24 = sphi %s3450_s24, %s4911_s24   ;;  %s3363_s23 = sphi %s3448_s23, %s4910_s23   ;;  %s3359_s22 = sphi %s3446_s22, %s4909_s22   ;;  %s3355_s21 = sphi %s3444_s21, %s4908_s21  }
   0x7   : > { %s2388_s26 = sadd.s32 4294967294, %s3367_s24   ;;  %s3469_s27 = sadd.s32 1, %s3367_s24  }
   0x8   : > { %s290_s28 = sadd.s32 1, %s3363_s23  ;;  %s287_s29 = ssub.s32 %s3367_s24, %s3469_s27 }
   0x9   : > { %p300_p0 = scmp.ne.s32.totalorder %s3363_s23, %s3359_s22  ;;  %p288_p1 = scmp.eq.s32.totalorder %s287_s29, 0 }
   0xa   : > { %p301_p2 = scmp.eq.s32.totalorder %s3465_s25, 1  ;;  %p306_p3 = scmp.ne.s32.totalorder %s3359_s22, %s3355_s21 }
   0xb   : > { %p307_p4 = scmp.eq.s32.totalorder %s2388_s26, 1  ;;  %p2389_p7 = scmp.ge.s32.totalorder %s3367_s24, 1 }
   0xc   : > { %s3480_s30 = scalar_select %p288_p1, %s3363_s23, %s290_s28  }
   0xd   : > { %p3482_p5 = por %p301_p2, %p300_p0  ;;  %p3486_p6 = por %p307_p4, %p306_p3 }
   0xe   : > { %4895 = sst [smem:[#allocation9_spill]] %s3480_s30  ;;  %p314_p8 = scmp.lt.s32.totalorder %s3367_s24, 3 }
   0xf   : > { %s4896_s13 = scalar_select %p3482_p5, 1, 0 }
  0x10   : > { %s4897_s14 = scalar_select %p3486_p6, 1, 0 }
  0x11   : > { %p4890_p9 = scmp.eq.s32.totalorder %s3465_s25, 0  ;;  %p3493_p10 = pnand %p2389_p7, %p314_p8 }
  0x12   : > { %s3369_s16 = smov [#allocation2]   ;;  %s4900_s4 = sld [smem:[#allocation10_spill]] }
  0x13   : > { %s4898_s15 = scalar_select %p3493_p10, 1, 0 }
  0x14   : > { %s335_s17 = sshll.u32 %s3369_s16, 4  ;;  %p2956_p11 = pneg %p3493_p10  ;;  %s336_s17 = int_to_ptr.vmem [resolvable:$true] %s335_s17 }
  0x16   : > { %p3501_p12 = pnand %p4890_p9, %p2956_p11 }
  0x18   : > { %s3273_s26 = scalar_lea.hbm %s4900_s4, 1024  ;;  %p3275_p0 = pneg %p3501_p12 }
  0x19   : > { %p3274_p13 = scmp.ne.s32.totalorder %s4900_s4, %s3273_s26  ;;  %p3280_p3 = scmp.lt.u32.totalorder %s3273_s26, %s4900_s4 }
  0x1b   : > { %p3276_p1 = pnand %p3275_p0, %p3274_p13 }
  0x1d   : > { %p3277_p2 = pneg %p3276_p1 }
  0x1f   : > { %p3282_p4 = pnand %p3280_p3, %p3277_p2 }
  0x21   : > { %3285 = shalt.err (!%p3282_p4)
}
  0x22   : > { %s3286_s23 = scalar_lea.vmem %s336_s17, 1024  ;;  %p3294_p9 = scmp.lt.s32.totalorder %s336_s17, %s336_s17 }
  0x23   : > { %p3287_p7 = scmp.ne.s32.totalorder %s336_s17, %s3286_s23  ;;  %p3295_p6 = scmp.lt.s32.totalorder %s3286_s23, %s3286_s23 }
  0x25   : > { %p3289_p8 = pnand %p3287_p7, %p3275_p0  ;;  %p3296_p5 = por %p3295_p6, %p3294_p9 }
  0x27   : > { %p3290_p11 = pneg %p3289_p8 }
  0x29   : > { %p3297_p10 = pnand %p3296_p5, %p3290_p11 }
  0x2b   : > { %3300 = shalt.err (!%p3297_p10)
}
  0x2c   : > { %s3370_s19 = smov 128   ;;  %s3371_s20 = smov 8  }
  0x2d   : > { %2959 = dma.hbm_to_vmem [thread:$0]  (!%p3501_p12), %s4900_s4, 1024, %s336_s17, [#allocation3], %s3370_s19, %s3370_s19, %s3371_s20  }
  0x2e   : > { %p4901_p13 = scmp.ne.s32.totalorder %s4898_s15, 0 }
  0x2f   : > { %p4902_p1 = scmp.eq.s32.totalorder (!%p4901_p13), %s3465_s25, 0 }
  0x30   : > { %380 = sbr.rel (%p4901_p13) target bundleno = 1773 (0x6ed), region = 68 }
  0x37   : > { %3346 = dma.done.wait (%p4902_p1), [#allocation3], 1024   ;;  %p4903_p0 = pmov %p4902_p1 }
  0x38   : > { %p422_p5 = scmp.lt.s32.totalorder %s3465_s25, 1  ;;  %v3372_v0 = vmov 0.0|0.0   ;;  %vm3373_vm0 = vmmov 0   ;;  %v3374_v1 = vmov 0.0   ;;  %v498_v2 = vld [vmem:[%s4884_s8] sm:$0xff]  ;;  %v499_v3 = vld [vmem:[%s4884_s8 + $0x8] sm:$0xff] }
  0x39   : > { %3348 = vsyncadd (%p4903_p0), [#allocation3], 4294966272  ;;  %2826 = vmatprep.subr.bf16.mxu0 %v3372_v0  ;;  %2609 = vmatprep.mubr.msk.f32.mxu0 %vm3373_vm0, %v3374_v1  ;;  %v500_v4 = vld [vmem:[%s4884_s8 + $0x10] sm:$0xff]  ;;  %v2827_v5 = vpack.c.bf16 %v499_v3, %v498_v2  ;;  %v501_v6 = vld [vmem:[%s4884_s8 + $0x18] sm:$0xff]  ;;  %vm585_vm1 = vcmask 516096   ;;  %vm1349_vm2 = vcmask 7168  }
  0x3a   : > { %s423_s23 = scalar_select %p422_p5, %s3465_s25, 1  ;;  %v2830_v7 = vpack.c.bf16 %v501_v6, %v500_v4  ;;  %v502_v8 = vld [vmem:[%s4884_s8 + $0x20] sm:$0xff]  ;;  %v503_v9 = vld [vmem:[%s4884_s8 + $0x28] sm:$0xff]  ;;  %v504_v15 = vld [vmem:[%s4884_s8 + $0x30] sm:$0xff]  ;;  %vm633_vm3 = vcmask 523264   ;;  %vm2015_vm4 = vcmask 1040384  }
  0x3b   : > { %2828 = vmatpush3.bf16.msra.mxu0 %v2827_v5  ;;  %v2833_v13 = vpack.c.bf16 %v503_v9, %v502_v8  ;;  %v505_v16 = vld [vmem:[%s4884_s8 + $0x38] sm:$0xff]  ;;  %v506_v22 = vld [vmem:[%s4884_s8 + $0x40] sm:$0xff]  ;;  %v507_v23 = vld [vmem:[%s4884_s8 + $0x48] sm:$0xff]  ;;  %s2437_s18 = sshll.u32 %s3465_s25, 12  ;;  %p4904_p9 = scmp.ne.s32.totalorder %s4896_s13, 0 }
  0x3c   : > { %s2436_s19 = sshll.u32 %s423_s23, 8  ;;  %2829 = vmatprep.subr.bf16.mxu0 %v3372_v0  ;;  %v2836_v20 = vpack.c.bf16 %v505_v16, %v504_v15  ;;  %v2839_v27 = vpack.c.bf16 %v507_v23, %v506_v22  ;;  %v508_v29 = vld [vmem:[%s4884_s8 + $0x50] sm:$0xff]  ;;  %v509_v30 = vld [vmem:[%s4884_s8 + $0x58] sm:$0xff]  ;;  %v510_v36 = vld [vmem:[%s4884_s8 + $0x60] sm:$0xff]  ;;  %s419_s23 = sand.u32 1, %s3359_s22  }
  0x3d   : > { %s3547_s30 = scalar_lea.vmem %s4876_s0, %s2436_s19  ;;  %v2842_v34 = vpack.c.bf16 %v509_v30, %v508_v29  ;;  %v511_v37 = vld [vmem:[%s4884_s8 + $0x68] sm:$0xff]  ;;  %v512_v43 = vld [vmem:[%s4884_s8 + $0x70] sm:$0xff]  ;;  %v513_v44 = vld [vmem:[%s4884_s8 + $0x78] sm:$0xff]  ;;  %s4717_s15 = sshll.u32 %s419_s23, 8 }
  0x3e   : > { %v3557_v10 = vld [vmem:[%s3547_s30] sm:$0xff]  ;;  %v3560_v11 = vld [vmem:[%s3547_s30 + $0x8] sm:$0xff]  ;;  %v3563_v12 = vld [vmem:[%s3547_s30 + $0x10] sm:$0xff]  ;;  %v2845_v41 = vpack.c.bf16 %v511_v37, %v510_v36  ;;  %v2848_v50 = vpack.c.bf16 %v513_v44, %v512_v43  ;;  %s4754_s17 = scalar_lea.vmem [#allocation5], %s4717_s15  ;;  %s4821_s16 = scalar_lea.hbm %s4888_s12, %s2437_s18 }
  0x3f   : > { %2831 = vmatpush3.bf16.msra.mxu0 %v2830_v7  ;;  %v459_v14 = vadd.f32 %v3560_v11, %v3557_v10  ;;  %2644 = vmatprep.mubr.f32.mxu1 %v3557_v10  ;;  %v3576_v17 = vld [vmem:[%s3547_s30 + $0x18] sm:$0xff]  ;;  %v3580_v19 = vld [vmem:[%s3547_s30 + $0x20] sm:$0xff]  ;;  %v3591_v24 = vld [vmem:[%s3547_s30 + $0x28] sm:$0xff]  ;;  %s2314_s4 = sshll.u32 %s4754_s17, 4  ;;  %s3376_s20 = smov [#allocation5]   ;;  %s4823_s4 = int_to_ptr.vmem [resolvable:$true] %s2314_s4 }
  0x40   : > { %2832 = vmatprep.subr.bf16.mxu0 %v3372_v0  ;;  %v3595_v26 = vld [vmem:[%s3547_s30 + $0x30] sm:$0xff]  ;;  %v3606_v31 = vld [vmem:[%s3547_s30 + $0x38] sm:$0xff]  ;;  %v3610_v33 = vld [vmem:[%s3547_s30 + $0x40] sm:$0xff]  ;;  %s3301_s19 = scalar_lea.vmem %s4823_s4, 4096  ;;  %s3305_s28 = sshll.u32 %s3376_s20, 4  ;;  %s3306_s28 = int_to_ptr.vmem [resolvable:$false] %s3305_s28 }
  0x41   : > { %v460_v18 = vadd.f32 %v459_v14, %v3563_v12  ;;  %v3621_v38 = vld [vmem:[%s3547_s30 + $0x48] sm:$0xff]  ;;  %v3625_v40 = vld [vmem:[%s3547_s30 + $0x50] sm:$0xff]  ;;  %v3636_v45 = vld [vmem:[%s3547_s30 + $0x58] sm:$0xff]  ;;  %p3302_p6 = scmp.ne.s32.totalorder %s4823_s4, %s3301_s19  ;;  %s3307_s29 = scalar_lea.vmem %s3306_s28, 8192 }
  0x42   : > { %v1108_v46 = vld [vmem:[%s4877_s1] sm:$0xff]  ;;  %v1109_v47 = vld [vmem:[%s4877_s1 + $0x8] sm:$0xff]  ;;  %v3655_v55 = vld [vmem:[%s3547_s30 + $0x70] sm:$0xff]  ;;  %p3308_p2 = scmp.lt.s32.totalorder %s4823_s4, %s3306_s28  ;;  %p3309_p3 = scmp.lt.s32.totalorder %s3307_s29, %s3301_s19 }
  0x43   : > { %2834 = vmatpush3.bf16.msra.mxu0 %v2833_v13  ;;  %v461_v21 = vadd.f32 %v460_v18, %v3576_v17  ;;  %v3646_v49 = vld [vmem:[%s3547_s30 + $0x60] sm:$0xff]  ;;  %v2882_v52 = vpack.c.bf16 %v1109_v47, %v1108_v46  ;;  %v3651_v53 = vld [vmem:[%s3547_s30 + $0x68] sm:$0xff]  ;;  %v3659_v57 = vld [vmem:[%s3547_s30 + $0x78] sm:$0xff]  ;;  %p3303_p10 = pnand %p3302_p6, %p4904_p9 }
  0x44   : > { %2835 = vmatprep.subr.bf16.mxu0 %v3372_v0  ;;  %v3663_v59 = vld [vmem:[%s3547_s30 + $0x80] sm:$0xff]  ;;  %v3667_v61 = vld [vmem:[%s3547_s30 + $0x88] sm:$0xff]  ;;  %v3671_v63 = vld [vmem:[%s3547_s30 + $0x90] sm:$0xff]  ;;  %p3310_p4 = por %p3309_p3, %p3308_p2 }
  0x45   : > { %v462_v25 = vadd.f32 %v461_v21, %v3580_v19  ;;  %v3675_v3 = vld [vmem:[%s3547_s30 + $0x98] sm:$0xff]  ;;  %v3679_v5 = vld [vmem:[%s3547_s30 + $0xa0] sm:$0xff]  ;;  %v3683_v7 = vld [vmem:[%s3547_s30 + $0xa8] sm:$0xff]  ;;  %p3304_p12 = pneg %p3303_p10 }
  0x46   : > { %v3687_v9 = vld [vmem:[%s3547_s30 + $0xb0] sm:$0xff]  ;;  %v3691_v14 = vld [vmem:[%s3547_s30 + $0xb8] sm:$0xff]  ;;  %v3695_v16 = vld [vmem:[%s3547_s30 + $0xc0] sm:$0xff] }
  0x47   : > { %2837 = vmatpush3.bf16.msra.mxu0 %v2836_v20  ;;  %v463_v28 = vadd.f32 %v462_v25, %v3591_v24  ;;  %v3699_v20 = vld [vmem:[%s3547_s30 + $0xc8] sm:$0xff]  ;;  %v3703_v22 = vld [vmem:[%s3547_s30 + $0xd0] sm:$0xff]  ;;  %v3707_v25 = vld [vmem:[%s3547_s30 + $0xd8] sm:$0xff]  ;;  %p3311_p7 = pnand %p3310_p4, %p3304_p12 }
  0x48   : > { %2838 = vmatprep.subr.bf16.mxu0 %v3372_v0  ;;  %v3715_v30 = vld [vmem:[%s3547_s30 + $0xe8] sm:$0xff]  ;;  %v3723_v36 = vld [vmem:[%s3547_s30 + $0xf8] sm:$0xff]  ;;  %v1110_v47 = vld [vmem:[%s4877_s1 + $0x10] sm:$0xff] }
  0x49   : > { %v464_v32 = vadd.f32 %v463_v28, %v3595_v26  ;;  %v3711_v28 = vld [vmem:[%s3547_s30 + $0xe0] sm:$0xff] }
  0x4b   : > { %2840 = vmatpush3.bf16.msra.mxu0 %v2839_v27  ;;  %v465_v35 = vadd.f32 %v464_v32, %v3606_v31 }
  0x4c   : > { %2841 = vmatprep.subr.bf16.mxu0 %v3372_v0 }
  0x4d   : > { %v466_v39 = vadd.f32 %v465_v35, %v3610_v33 }
  0x4f   : > { %2843 = vmatpush3.bf16.msra.mxu0 %v2842_v34  ;;  %v467_v42 = vadd.f32 %v466_v39, %v3621_v38  ;;  %v3719_v34 = vld [vmem:[%s3547_s30 + $0xf0] sm:$0xff] }
  0x50   : > { %2844 = vmatprep.subr.bf16.mxu0 %v3372_v0 }
  0x51   : > { %v468_v48 = vadd.f32 %v467_v42, %v3625_v40 }
  0x53   : > { %2846 = vmatpush3.bf16.msra.mxu0 %v2845_v41  ;;  %v469_v51 = vadd.f32 %v468_v48, %v3636_v45  ;;  %v1111_v48 = vld [vmem:[%s4877_s1 + $0x18] sm:$0xff] }
  0x54   : > { %2847 = vmatprep.subr.bf16.mxu0 %v3372_v0 }
  0x55   : > { %v470_v54 = vadd.f32 %v469_v51, %v3646_v49 }
  0x57   : > { %2849 = vmatpush3.bf16.msra.mxu0 %v2848_v50  ;;  %v471_v56 = vadd.f32 %v470_v54, %v3651_v53  ;;  %v2886_v54 = vpack.c.bf16 %v1111_v48, %v1110_v47 }
  0x58   : > { %2883 = vmatprep.subr.bf16.mxu0 %v2882_v52 }
  0x59   : > { %v472_v58 = vadd.f32 %v471_v56, %v3655_v55  ;;  %v1112_v56 = vld [vmem:[%s4877_s1 + $0x20] sm:$0xff] }
  0x5b   : > { %v473_v60 = vadd.f32 %v472_v58, %v3659_v57  ;;  %v1113_v58 = vld [vmem:[%s4877_s1 + $0x28] sm:$0xff] }
  0x5d   : > { %v474_v62 = vadd.f32 %v473_v60, %v3663_v59  ;;  %v2890_v60 = vpack.c.bf16 %v1113_v58, %v1112_v56 }
  0x5f   : > { %v475_v2 = vadd.f32 %v474_v62, %v3667_v61  ;;  %v1114_v62 = vld [vmem:[%s4877_s1 + $0x30] sm:$0xff] }
  0x61   : > { %v476_v4 = vadd.f32 %v475_v2, %v3671_v63  ;;  %v1115_v2 = vld [vmem:[%s4877_s1 + $0x38] sm:$0xff] }
  0x63   : > { %v477_v6 = vadd.f32 %v476_v4, %v3675_v3  ;;  %v2894_v4 = vpack.c.bf16 %v1115_v2, %v1114_v62 }
  0x65   : > { %v478_v8 = vadd.f32 %v477_v6, %v3679_v5  ;;  %v1116_v6 = vld [vmem:[%s4877_s1 + $0x40] sm:$0xff] }
  0x67   : > { %v479_v13 = vadd.f32 %v478_v8, %v3683_v7  ;;  %v1118_v8 = vld [vmem:[%s4877_s1 + $0x50] sm:$0xff] }
  0x69   : > { %v480_v15 = vadd.f32 %v479_v13, %v3687_v9  ;;  %v1119_v13 = vld [vmem:[%s4877_s1 + $0x58] sm:$0xff] }
  0x6b   : > { %v481_v18 = vadd.f32 %v480_v15, %v3691_v14  ;;  %v2902_v15 = vpack.c.bf16 %v1119_v13, %v1118_v8 }
  0x6d   : > { %v482_v21 = vadd.f32 %v481_v18, %v3695_v16  ;;  %v1120_v18 = vld [vmem:[%s4877_s1 + $0x60] sm:$0xff] }
  0x6f   : > { %v483_v23 = vadd.f32 %v482_v21, %v3699_v20  ;;  %v1121_v21 = vld [vmem:[%s4877_s1 + $0x68] sm:$0xff] }
  0x71   : > { %v484_v27 = vadd.f32 %v483_v23, %v3703_v22  ;;  %v2906_v23 = vpack.c.bf16 %v1121_v21, %v1120_v18 }
  0x73   : > { %v485_v29 = vadd.f32 %v484_v27, %v3707_v25  ;;  %v1122_v27 = vld [vmem:[%s4877_s1 + $0x70] sm:$0xff] }
  0x75   : > { %v486_v32 = vadd.f32 %v485_v29, %v3711_v28  ;;  %v1123_v29 = vld [vmem:[%s4877_s1 + $0x78] sm:$0xff] }
  0x77   : > { %v487_v35 = vadd.f32 %v486_v32, %v3715_v30  ;;  %v2910_v32 = vpack.c.bf16 %v1123_v29, %v1122_v27 }
  0x79   : > { %v488_v37 = vadd.f32 %v487_v35, %v3719_v34 }
  0x7b   : > { %v489_v39 = vadd.f32 %v488_v37, %v3723_v36 }
  0x7d   : > { %v490_v41 = vrot.slane %v489_v39, 4 }
  0x7f   : > { %v491_v42 = vadd.f32 %v490_v41, %v489_v39 }
  0x81   : > { %v492_v43 = vrot.slane %v491_v42, 2 }
  0x83   : > { %v493_v44 = vadd.f32 %v492_v43, %v491_v42 }
  0x85   : > { %v494_v46 = vrot.slane %v493_v44, 1 }
  0x87   : > { %v495_v50 = vadd.f32 %v494_v46, %v493_v44 }
  0x89   : > { %v497_v51 = vmul.f32 0.00390625, %v495_v50 }
  0x8b   : > { %2610 = vmatmul.mubr.f32.vlgmr.msra.gmra.mrb[0].mxu0 %v497_v51 }
  0x8c   : > { %2885 = vmatpush3.bf16.msra.mxu0 %v2882_v52  ;;  %2724 = vmatprep.mubr.f32.mxu0 %v3557_v10  ;;  %v1117_v10 = vld [vmem:[%s4877_s1 + $0x48] sm:$0xff] }
  0x8d   : > { %2887 = vmatprep.subr.bf16.mxu0 %v2886_v54  ;;  %v2898_v52 = vpack.c.bf16 %v1117_v10, %v1116_v6 }
  0x90   : > { %2889 = vmatpush3.bf16.msra.mxu0 %v2886_v54 }
  0x91   : > { %2891 = vmatprep.subr.bf16.mxu0 %v2890_v60 }
  0x94   : > { %2893 = vmatpush3.bf16.msra.mxu0 %v2890_v60 }
  0x95   : > { %2895 = vmatprep.subr.bf16.mxu0 %v2894_v4 }
  0x98   : > { %2897 = vmatpush3.bf16.msra.mxu0 %v2894_v4 }
  0x99   : > { %2899 = vmatprep.subr.bf16.mxu0 %v2898_v52 }
  0x9c   : > { %2901 = vmatpush3.bf16.msra.mxu0 %v2898_v52 }
  0x9d   : > { %2903 = vmatprep.subr.bf16.mxu0 %v2902_v15 }
  0xa0   : > { %2905 = vmatpush3.bf16.msra.mxu0 %v2902_v15 }
  0xa1   : > { %2907 = vmatprep.subr.bf16.mxu0 %v2906_v23 }
  0xa4   : > { %2909 = vmatpush3.bf16.msra.mxu0 %v2906_v23 }
  0xa5   : > { %2911 = vmatprep.subr.bf16.mxu0 %v2910_v32 }
  0xa8   : > { %2913 = vmatpush3.bf16.msra.mxu0 %v2910_v32 }
  0xab   : > { %2725 = vmatmul.mubr.f32.vlgmr.msra.gmra.mrb[2].mxu0 %v3560_v11  ;;  %v514_v11 = vld [vmem:[%s4885_s9] sm:$0x1] }
  0xac   : > { %2727 = vmatprep.mubr.f32.mxu0 %v3563_v12 }
  0xaf   : > { %2728 = vmatmul.mubr.f32.gmra.mrb[4].mxu0 %v3576_v17 }
  0xb0   : > { %2730 = vmatprep.mubr.f32.mxu0 %v3580_v19 }
  0xb3   : > { %2731 = vmatmul.mubr.f32.gmra.mrb[6].mxu0 %v3591_v24 }
  0xb4   : > { %2733 = vmatprep.mubr.f32.mxu0 %v3595_v26 }
  0xb7   : > { %2734 = vmatmul.mubr.f32.gmra.mrb[8].mxu0 %v3606_v31 }
  0xb8   : > { %2736 = vmatprep.mubr.f32.mxu0 %v3610_v33 }
  0xbb   : > { %2737 = vmatmul.mubr.f32.gmra.mrb[10].mxu0 %v3621_v38 }
  0xbc   : > { %2739 = vmatprep.mubr.f32.mxu0 %v3625_v40 }
  0xbf   : > { %2740 = vmatmul.mubr.f32.gmra.mrb[12].mxu0 %v3636_v45 }
  0xc0   : > { %2742 = vmatprep.mubr.f32.mxu0 %v3646_v49 }
  0xc3   : > { %2743 = vmatmul.mubr.f32.gmra.mrb[14].mxu0 %v3651_v53 }
  0xc4   : > { %2745 = vmatprep.mubr.f32.mxu0 %v3655_v55 }
  0xc7   : > { %2746 = vmatmul.mubr.f32.gmra.mrb[16].mxu0 %v3659_v57 }
  0xc8   : > { %2748 = vmatprep.mubr.f32.mxu0 %v3663_v59 }
  0xcb   : > { %2749 = vmatmul.mubr.f32.gmra.mrb[18].mxu0 %v3667_v61 }
  0xcc   : > { %2751 = vmatprep.mubr.f32.mxu0 %v3671_v63 }
  0xcf   : > { %2752 = vmatmul.mubr.f32.gmra.mrb[20].mxu0 %v3675_v3 }
  0xd0   : > { %2754 = vmatprep.mubr.f32.mxu0 %v3679_v5 }
  0xd3   : > { %2755 = vmatmul.mubr.f32.gmra.mrb[22].mxu0 %v3683_v7 }
  0xd4   : > { %2757 = vmatprep.mubr.f32.mxu0 %v3687_v9 }
  0xd7   : > { %2758 = vmatmul.mubr.f32.gmra.mrb[24].mxu0 %v3691_v14 }
  0xd8   : > { %2760 = vmatprep.mubr.f32.mxu0 %v3695_v16 }
  0xdb   : > { %2761 = vmatmul.mubr.f32.gmra.mrb[26].mxu0 %v3699_v20 }
  0xdc   : > { %2763 = vmatprep.mubr.f32.mxu0 %v3703_v22 }
  0xdf   : > { %2764 = vmatmul.mubr.f32.gmra.mrb[28].mxu0 %v3707_v25 }
  0xe0   : > { %2766 = vmatprep.mubr.f32.mxu0 %v3711_v28 }
  0xe3   : > { %2767 = vmatmul.mubr.f32.gmra.mrb[30].mxu0 %v3715_v30 }
  0xe4   : > { %2769 = vmatprep.mubr.f32.mxu0 %v3719_v34 }
  0xe7   : > { %2770 = vmatmul.mubr.f32.gmra.mrb[32].mxu0 %v3723_v36 }
 0x15e   : > { %v581_v12 = vpop.f32.mrb[0].mxu0 }
 0x15f   : > { %v3804_v17 = vadd.f32 %v581_v12, %v514_v11  ;;  %v2611_v19 = vpop.f32.mrb[1].mxu0 }
 0x161   : > { %v586_v24 = vsel %vm585_vm1, %v3804_v17, -inf }
 0x162   : > { %587 = vmax.xlane.f32.xlu0 %v586_v24 }
 0x17e   : > { %v3808_v26 = vpop.f32.mrb[2].mxu0 }
 0x17f   : > { %v3810_v31 = vpop.f32.mrb[3].mxu0  ;;  %v1351_v40 = vsel %vm1349_vm2, %v3808_v26, -inf }
 0x180   : > { %v1350_v45 = vsel %vm1349_vm2, %v3810_v31, -inf }
 0x182   : > { %v3812_v33 = vpop.f32.mrb[4].mxu0 }
 0x183   : > { %v3814_v38 = vpop.f32.mrb[5].mxu0  ;;  %v1353_v61 = vsel %vm1349_vm2, %v3812_v33, -inf }
 0x184   : > { %v1352_v3 = vsel %vm1349_vm2, %v3814_v38, -inf }
 0x186   : > { %v3820_v49 = vpop.f32.mrb[6].mxu0 }
 0x187   : > { %v1356_v53 = vsel %vm1349_vm2, %v3820_v49, -inf  ;;  %v3824_v55 = vpop.f32.mrb[7].mxu0 }
 0x188   : > { %v1357_v57 = vmax.f32 %v1351_v40, %v1356_v53  ;;  %v1354_v59 = vsel %vm1349_vm2, %v3824_v55, -inf }
 0x189   : > { %v1355_v63 = vmax.f32 %v1350_v45, %v1354_v59 }
 0x18a   : > { %v3832_v5 = vpop.f32.mrb[8].mxu0 }
 0x18b   : > { %v1360_v7 = vsel %vm1349_vm2, %v3832_v5, -inf  ;;  %v3836_v9 = vpop.f32.mrb[9].mxu0 }
 0x18c   : > { %v1361_v14 = vmax.f32 %v1353_v61, %v1360_v7  ;;  %v1358_v16 = vsel %vm1349_vm2, %v3836_v9, -inf }
 0x18d   : > { %v1359_v20 = vmax.f32 %v1352_v3, %v1358_v16 }
 0x18e   : > { %v3840_v22 = vpop.f32.mrb[10].mxu0 }
 0x18f   : > { %v1364_v25 = vsel %vm1349_vm2, %v3840_v22, -inf  ;;  %v3844_v28 = vpop.f32.mrb[11].mxu0 }
 0x190   : > { %v1365_v30 = vmax.f32 %v1357_v57, %v1364_v25  ;;  %v1362_v34 = vsel %vm1349_vm2, %v3844_v28, -inf }
 0x191   : > { %v1363_v35 = vmax.f32 %v1355_v63, %v1362_v34 }
 0x192   : > { %v3848_v36 = vpop.f32.mrb[12].mxu0 }
 0x193   : > { %v1368_v37 = vsel %vm1349_vm2, %v3848_v36, -inf  ;;  %v3852_v39 = vpop.f32.mrb[13].mxu0 }
 0x194   : > { %v1369_v41 = vmax.f32 %v1361_v14, %v1368_v37  ;;  %v1366_v42 = vsel %vm1349_vm2, %v3852_v39, -inf }
 0x195   : > { %v1367_v43 = vmax.f32 %v1359_v20, %v1366_v42 }
 0x196   : > { %v3856_v44 = vpop.f32.mrb[14].mxu0 }
 0x197   : > { %v1372_v46 = vsel %vm1349_vm2, %v3856_v44, -inf  ;;  %v3860_v47 = vpop.f32.mrb[15].mxu0 }
 0x198   : > { %v1373_v48 = vmax.f32 %v1365_v30, %v1372_v46  ;;  %v1370_v50 = vsel %vm1349_vm2, %v3860_v47, -inf  ;;  %v3375_v30 = vmov 0  }
 0x199   : > { %v1371_v51 = vmax.f32 %v1363_v35, %v1370_v50  ;;  %3009 = vset.pattern.permute.xlu1 %v3375_v30  ;;  %3008 = vset.pattern.permute.xlu0 %v3375_v30 }
 0x19a   : > { %v3864_v54 = vpop.f32.mrb[16].mxu0 }
 0x19b   : > { %v1376_v56 = vsel %vm1349_vm2, %v3864_v54, -inf  ;;  %v3868_v58 = vpop.f32.mrb[17].mxu0 }
 0x19c   : > { %v1377_v60 = vmax.f32 %v1369_v41, %v1376_v56  ;;  %v1374_v62 = vsel %vm1349_vm2, %v3868_v58, -inf }
 0x19d   : > { %v1375_v2 = vmax.f32 %v1367_v43, %v1374_v62 }
 0x19e   : > { %v3872_v4 = vpop.f32.mrb[18].mxu0 }
 0x19f   : > { %v1380_v6 = vsel %vm1349_vm2, %v3872_v4, -inf  ;;  %v3876_v10 = vpop.f32.mrb[19].mxu0 }
 0x1a0   : > { %v1381_v52 = vmax.f32 %v1373_v48, %v1380_v6  ;;  %v1378_v8 = vsel %vm1349_vm2, %v3876_v10, -inf }
 0x1a1   : > { %v1379_v13 = vmax.f32 %v1371_v51, %v1378_v8 }
 0x1a2   : > { %v3880_v15 = vpop.f32.mrb[20].mxu0 }
 0x1a3   : > { %v1384_v18 = vsel %vm1349_vm2, %v3880_v15, -inf  ;;  %v3884_v21 = vpop.f32.mrb[21].mxu0 }
 0x1a4   : > { %v1385_v23 = vmax.f32 %v1377_v60, %v1384_v18  ;;  %v1382_v27 = vsel %vm1349_vm2, %v3884_v21, -inf }
 0x1a5   : > { %v1383_v29 = vmax.f32 %v1375_v2, %v1382_v27 }
 0x1a6   : > { %v3888_v32 = vpop.f32.mrb[22].mxu0 }
 0x1a7   : > { %v1388_v11 = vsel %vm1349_vm2, %v3888_v32, -inf  ;;  %v3892_v12 = vpop.f32.mrb[23].mxu0 }
 0x1a8   : > { %v1389_v19 = vmax.f32 %v1381_v52, %v1388_v11  ;;  %v1386_v24 = vsel %vm1349_vm2, %v3892_v12, -inf }
 0x1a9   : > { %v1387_v40 = vmax.f32 %v1379_v13, %v1386_v24 }
 0x1aa   : > { %v3896_v45 = vpop.f32.mrb[24].mxu0 }
 0x1ab   : > { %v1392_v53 = vsel %vm1349_vm2, %v3896_v45, -inf  ;;  %v3900_v57 = vpop.f32.mrb[25].mxu0 }
 0x1ac   : > { %v1393_v59 = vmax.f32 %v1385_v23, %v1392_v53  ;;  %v1390_v61 = vsel %vm1349_vm2, %v3900_v57, -inf }
 0x1ad   : > { %v1391_v63 = vmax.f32 %v1383_v29, %v1390_v61 }
 0x1ae   : > { %v3904_v3 = vpop.f32.mrb[26].mxu0 }
 0x1af   : > { %v1396_v7 = vsel %vm1349_vm2, %v3904_v3, -inf  ;;  %v3908_v14 = vpop.f32.mrb[27].mxu0 }
 0x1b0   : > { %v1397_v16 = vmax.f32 %v1389_v19, %v1396_v7  ;;  %v1394_v20 = vsel %vm1349_vm2, %v3908_v14, -inf }
 0x1b1   : > { %v1395_v25 = vmax.f32 %v1387_v40, %v1394_v20 }
 0x1b2   : > { %v3912_v34 = vpop.f32.mrb[28].mxu0 }
 0x1b3   : > { %v1400_v35 = vsel %vm1349_vm2, %v3912_v34, -inf  ;;  %v3916_v37 = vpop.f32.mrb[29].mxu0 }
 0x1b4   : > { %v1401_v41 = vmax.f32 %v1393_v59, %v1400_v35  ;;  %v1398_v42 = vsel %vm1349_vm2, %v3916_v37, -inf }
 0x1b5   : > { %v1399_v43 = vmax.f32 %v1391_v63, %v1398_v42 }
 0x1b6   : > { %v3920_v46 = vpop.f32.mrb[30].mxu0 }
 0x1b7   : > { %v1404_v48 = vsel %vm1349_vm2, %v3920_v46, -inf  ;;  %v3924_v50 = vpop.f32.mrb[31].mxu0 }
 0x1b8   : > { %v1405_v51 = vmax.f32 %v1397_v16, %v1404_v48  ;;  %v1402_v56 = vsel %vm1349_vm2, %v3924_v50, -inf }
 0x1b9   : > { %v1403_v60 = vmax.f32 %v1395_v25, %v1402_v56 }
 0x1ba   : > { %v3928_v62 = vpop.f32.mrb[32].mxu0 }
 0x1bb   : > { %v1410_v2 = vmax.f32 %v1403_v60, %v1405_v51  ;;  %v1408_v6 = vsel %vm1349_vm2, %v3928_v62, -inf  ;;  %v3932_v52 = vpop.f32.mrb[33].mxu0 }
 0x1bc   : > { %v1409_v8 = vmax.f32 %v1401_v41, %v1408_v6  ;;  %v1406_v13 = vsel %vm1349_vm2, %v3932_v52, -inf }
 0x1bd   : > { %v1407_v18 = vmax.f32 %v1399_v43, %v1406_v13 }
 0x1bf   : > { %v1411_v23 = vmax.f32 %v1407_v18, %v1409_v8 }
 0x1c1   : > { %v1412_v27 = vmax.f32 %v1410_v2, %v1411_v23 }
 0x1c3   : > { %v1413_v29 = vrot.slane %v1412_v27, 4 }
 0x1c5   : > { %v1414_v11 = vmax.f32 %v1412_v27, %v1413_v29 }
 0x1c7   : > { %v1415_v19 = vrot.slane %v1414_v11, 2 }
 0x1c9   : > { %v1416_v24 = vmax.f32 %v1414_v11, %v1415_v19 }
 0x1cb   : > { %v1417_v40 = vrot.slane %v1416_v24, 1 }
 0x1cd   : > { %v3936_v53 = vmax.f32 %v1416_v24, %v1417_v40 }
 0x1cf   : > { %v1419_v59 = vsub.f32 %v3810_v31, %v3936_v53  ;;  %v1420_v61 = vsub.f32 %v3808_v26, %v3936_v53  ;;  %v1421_v63 = vsub.f32 %v3814_v38, %v3936_v53  ;;  %v1422_v7 = vsub.f32 %v3812_v33, %v3936_v53 }
 0x1d0   : > { %v1423_v16 = vsub.f32 %v3824_v55, %v3936_v53  ;;  %v1424_v20 = vsub.f32 %v3820_v49, %v3936_v53  ;;  %v1425_v25 = vsub.f32 %v3836_v9, %v3936_v53  ;;  %v1426_v31 = vsub.f32 %v3832_v5, %v3936_v53 }
 0x1d1   : > { %v1427_v26 = vsub.f32 %v3844_v28, %v3936_v53  ;;  %v1428_v38 = vsub.f32 %v3840_v22, %v3936_v53  ;;  %v1429_v33 = vsub.f32 %v3852_v39, %v3936_v53  ;;  %v1430_v55 = vsub.f32 %v3848_v36, %v3936_v53 }
 0x1d2   : > { %v1431_v49 = vsub.f32 %v3860_v47, %v3936_v53  ;;  %v1432_v9 = vsub.f32 %v3856_v44, %v3936_v53  ;;  %v1433_v5 = vsub.f32 %v3868_v58, %v3936_v53  ;;  %v1434_v28 = vsub.f32 %v3864_v54, %v3936_v53 }
 0x1d3   : > { %v1435_v22 = vsub.f32 %v3876_v10, %v3936_v53  ;;  %v1436_v39 = vsub.f32 %v3872_v4, %v3936_v53  ;;  %v1437_v36 = vsub.f32 %v3884_v21, %v3936_v53  ;;  %v1438_v47 = vsub.f32 %v3880_v15, %v3936_v53 }
 0x1d4   : > { %v1439_v44 = vsub.f32 %v3892_v12, %v3936_v53  ;;  %v1440_v58 = vsub.f32 %v3888_v32, %v3936_v53  ;;  %v1441_v30 = vsub.f32 %v3900_v57, %v3936_v53  ;;  %v1442_v35 = vsub.f32 %v3896_v45, %v3936_v53 }
 0x1d5   : > { %v1443_v41 = vsub.f32 %v3908_v14, %v3936_v53  ;;  %v1444_v42 = vsub.f32 %v3904_v3, %v3936_v53  ;;  %v1445_v43 = vsub.f32 %v3916_v37, %v3936_v53  ;;  %v1446_v48 = vsub.f32 %v3912_v34, %v3936_v53 }
 0x1d6   : > { %v1447_v51 = vsub.f32 %v3924_v50, %v3936_v53  ;;  %v1448_v56 = vsub.f32 %v3920_v46, %v3936_v53  ;;  %v1449_v60 = vsub.f32 %v3932_v52, %v3936_v53  ;;  %v1450_v2 = vsub.f32 %v3928_v62, %v3936_v53 }
 0x1d7   : > { %v1451_v6 = vmul.f32 1.442695, %v1419_v59  ;;  %v1453_v8 = vmul.f32 1.442695, %v1420_v61  ;;  %v1455_v13 = vmul.f32 1.442695, %v1421_v63 }
 0x1d8   : > { %v1457_v18 = vmul.f32 1.442695, %v1422_v7  ;;  %v1459_v23 = vmul.f32 1.442695, %v1423_v16  ;;  %v1461_v27 = vmul.f32 1.442695, %v1424_v20 }
 0x1d9   : > { %3010 = vpow2.f32 %v1451_v6  ;;  %v1463_v29 = vmul.f32 1.442695, %v1425_v25  ;;  %v1465_v11 = vmul.f32 1.442695, %v1426_v31  ;;  %v1467_v19 = vmul.f32 1.442695, %v1427_v26 }
 0x1da   : > { %3012 = vpow2.f32 %v1453_v8  ;;  %v1469_v59 = vmul.f32 1.442695, %v1428_v38  ;;  %v1471_v20 = vmul.f32 1.442695, %v1429_v33  ;;  %v1473_v38 = vmul.f32 1.442695, %v1430_v55 }
 0x1db   : > { %3014 = vpow2.f32 %v1455_v13  ;;  %v1485_v54 = vmul.f32 1.442695, %v1436_v39  ;;  %v1487_v10 = vmul.f32 1.442695, %v1437_v36  ;;  %v1489_v4 = vmul.f32 1.442695, %v1438_v47 }
 0x1dc   : > { %3016 = vpow2.f32 %v1457_v18  ;;  %v1475_v18 = vmul.f32 1.442695, %v1431_v49  ;;  %v1491_v21 = vmul.f32 1.442695, %v1439_v44  ;;  %v1493_v15 = vmul.f32 1.442695, %v1440_v58 }
 0x1dd   : > { %3018 = vpow2.f32 %v1459_v23  ;;  %v1495_v12 = vmul.f32 1.442695, %v1441_v30  ;;  %v1497_v32 = vmul.f32 1.442695, %v1442_v35  ;;  %v1499_v57 = vmul.f32 1.442695, %v1443_v41 }
 0x1de   : > { %3020 = vpow2.f32 %v1461_v27  ;;  %v1501_v45 = vmul.f32 1.442695, %v1444_v42  ;;  %v1507_v37 = vmul.f32 1.442695, %v1447_v51  ;;  %v1509_v34 = vmul.f32 1.442695, %v1448_v56 }
 0x1df   : > { %3022 = vpow2.f32 %v1463_v29  ;;  %v1477_v29 = vmul.f32 1.442695, %v1432_v9  ;;  %v1481_v9 = vmul.f32 1.442695, %v1434_v28  ;;  %v1511_v50 = vmul.f32 1.442695, %v1449_v60 }
 0x1e0   : > { %3024 = vpow2.f32 %v1465_v11  ;;  %v1513_v46 = vmul.f32 1.442695, %v1450_v2 }
 0x1e1   : > { %3026 = vpow2.f32 %v1467_v19 }
 0x1e2   : > { %3028 = vpow2.f32 %v1469_v59  ;;  %v1479_v59 = vmul.f32 1.442695, %v1433_v5  ;;  %v1483_v5 = vmul.f32 1.442695, %v1435_v22 }
 0x1e3   : > { %v4002_v24 = vpop.eup %3010  ;;  %3030 = vpow2.f32 %v1471_v20 }
 0x1e4   : > { %v4004_v40 = vpop.eup %3012  ;;  %v1515_v61 = vsel %vm1349_vm2, %v4002_v24, 0.0  ;;  %3032 = vpow2.f32 %v1473_v38 }
 0x1e5   : > { %v4008_v63 = vpop.eup %3014  ;;  %v1516_v7 = vsel %vm1349_vm2, %v4004_v40, 0.0  ;;  %3034 = vpow2.f32 %v1475_v18 }
 0x1e6   : > { %v4012_v16 = vpop.eup %3016  ;;  %v1517_v25 = vadd.f32 %v1516_v7, %v1515_v61  ;;  %v1518_v31 = vsel %vm1349_vm2, %v4008_v63, 0.0  ;;  %3036 = vpow2.f32 %v1477_v29 }
 0x1e7   : > { %v4016_v26 = vpop.eup %3018  ;;  %v1520_v8 = vsel %vm1349_vm2, %v4012_v16, 0.0  ;;  %3038 = vpow2.f32 %v1479_v59 }
 0x1e8   : > { %v1519_v6 = vadd.f32 %v1518_v31, %v1517_v25  ;;  %v4020_v13 = vpop.eup %3020  ;;  %v1522_v33 = vsel %vm1349_vm2, %v4016_v26, 0.0  ;;  %3040 = vpow2.f32 %v1481_v9 }
 0x1e9   : > { %v4024_v27 = vpop.eup %3022  ;;  %v1524_v55 = vsel %vm1349_vm2, %v4020_v13, 0.0  ;;  %3042 = vpow2.f32 %v1483_v5 }
 0x1ea   : > { %v1521_v23 = vadd.f32 %v1520_v8, %v1519_v6  ;;  %v4028_v19 = vpop.eup %3024  ;;  %v1526_v49 = vsel %vm1349_vm2, %v4024_v27, 0.0  ;;  %3044 = vpow2.f32 %v1485_v54 }
 0x1eb   : > { %v4032_v20 = vpop.eup %3026  ;;  %v1528_v31 = vsel %vm1349_vm2, %v4028_v19, 0.0 }
 0x1ec   : > { %v1523_v11 = vadd.f32 %v1522_v33, %v1521_v23  ;;  %v4040_v6 = vpop.eup %3028  ;;  %v1530_v18 = vsel %vm1349_vm2, %v4032_v20, 0.0 }
 0x1ed   : > { %v4047_v23 = vpop.eup %3030 }
 0x1ee   : > { %v1525_v61 = vadd.f32 %v1524_v55, %v1523_v11  ;;  %v4054_v29 = vpop.eup %3032  ;;  %v1534_v11 = vsel %vm1349_vm2, %v4047_v23, 0.0 }
 0x1ef   : > { %v588_v7 = vpop.xlane.xlu0 %587  ;;  %v4061_v55 = vpop.eup %3034  ;;  %v1536_v59 = vsel %vm1349_vm2, %v4054_v29, 0.0 }
 0x1f0   : > { %v1527_v25 = vadd.f32 %v1526_v49, %v1525_v61  ;;  %v589_v38 = vsub.f32 %v3804_v17, %v588_v7  ;;  %v1532_v17 = vsel %vm1349_vm2, %v4040_v6, 0.0  ;;  %v4068_v61 = vpop.eup %3036  ;;  %v1538_v49 = vsel %vm1349_vm2, %v4061_v55, 0.0 }
 0x1f1   : > { %v4075_v7 = vpop.eup %3038  ;;  %v1540_v9 = vsel %vm1349_vm2, %v4068_v61, 0.0 }
 0x1f2   : > { %v1529_v8 = vadd.f32 %v1528_v31, %v1527_v25  ;;  %v590_v33 = vmul.f32 1.442695, %v589_v38  ;;  %v4082_v25 = vpop.eup %3040  ;;  %v1542_v31 = vsel %vm1349_vm2, %v4075_v7, 0.0 }
 0x1f3   : > { %v4089_v38 = vpop.eup %3042  ;;  %v1544_v5 = vsel %vm1349_vm2, %v4082_v25, 0.0 }
 0x1f4   : > { %v1531_v28 = vadd.f32 %v1530_v18, %v1529_v8  ;;  %3046 = vpow2.f32 %v590_v33  ;;  %v4096_v8 = vpop.eup %3044  ;;  %v1546_v54 = vsel %vm1349_vm2, %v4089_v38, 0.0  ;;  %v1503_v33 = vmul.f32 1.442695, %v1445_v43 }
 0x1f5   : > { %3048 = vpow2.f32 %v1487_v10  ;;  %v1548_v14 = vsel %vm1349_vm2, %v4096_v8, 0.0 }
 0x1f6   : > { %v1533_v22 = vadd.f32 %v1532_v17, %v1531_v28  ;;  %3050 = vpow2.f32 %v1489_v4 }
 0x1f7   : > { %3052 = vpow2.f32 %v1491_v21 }
 0x1f8   : > { %v1535_v39 = vadd.f32 %v1534_v11, %v1533_v22  ;;  %3054 = vpow2.f32 %v1493_v15  ;;  %v1505_v22 = vmul.f32 1.442695, %v1446_v48 }
 0x1f9   : > { %3056 = vpow2.f32 %v1495_v12 }
 0x1fa   : > { %v1537_v36 = vadd.f32 %v1536_v59, %v1535_v39  ;;  %3058 = vpow2.f32 %v1497_v32 }
 0x1fb   : > { %3060 = vpow2.f32 %v1499_v57 }
 0x1fc   : > { %v1539_v47 = vadd.f32 %v1538_v49, %v1537_v36  ;;  %3062 = vpow2.f32 %v1501_v45 }
 0x1fd   : > { %3064 = vpow2.f32 %v1503_v33 }
 0x1fe   : > { %v1541_v44 = vadd.f32 %v1540_v9, %v1539_v47  ;;  %v4101_v18 = vpop.eup %3046  ;;  %3066 = vpow2.f32 %v1505_v22 }
 0x1ff   : > { %v4105_v28 = vpop.eup %3048  ;;  %v592_v17 = vsel %vm585_vm1, %v4101_v18, 0.0  ;;  %3068 = vpow2.f32 %v1507_v37 }
 0x200   : > { %v1543_v58 = vadd.f32 %v1542_v31, %v1541_v44  ;;  %593 = vadd.xlane.f32.xlu0 %v592_v17  ;;  %v4114_v41 = vpop.eup %3050  ;;  %v1550_v3 = vsel %vm1349_vm2, %v4105_v28, 0.0  ;;  %3070 = vpow2.f32 %v1509_v34 }
 0x201   : > { %v4121_v42 = vpop.eup %3052  ;;  %v1552_v4 = vsel %vm1349_vm2, %v4114_v41, 0.0  ;;  %3072 = vpow2.f32 %v1511_v50 }
 0x202   : > { %v1545_v30 = vadd.f32 %v1544_v5, %v1543_v58  ;;  %v4128_v39 = vpop.eup %3054  ;;  %v1554_v59 = vsel %vm1349_vm2, %v4121_v42, 0.0  ;;  %3074 = vpow2.f32 %v1513_v46 }
 0x203   : > { %v4135_v21 = vpop.eup %3056  ;;  %v1556_v36 = vsel %vm1349_vm2, %v4128_v39, 0.0 }
 0x204   : > { %v1547_v35 = vadd.f32 %v1546_v54, %v1545_v30  ;;  %v4142_v49 = vpop.eup %3058  ;;  %v1558_v15 = vsel %vm1349_vm2, %v4135_v21, 0.0 }
 0x205   : > { %v4149_v47 = vpop.eup %3060  ;;  %v1560_v9 = vsel %vm1349_vm2, %v4142_v49, 0.0 }
 0x206   : > { %v1549_v10 = vadd.f32 %v1548_v14, %v1547_v35  ;;  %v4156_v12 = vpop.eup %3062  ;;  %v1562_v60 = vsel %vm1349_vm2, %v4149_v47, 0.0 }
 0x207   : > { %v4160_v44 = vpop.eup %3064  ;;  %v1564_v32 = vsel %vm1349_vm2, %v4156_v12, 0.0 }
 0x208   : > { %v1551_v11 = vadd.f32 %v1550_v3, %v1549_v10  ;;  %v4164_v62 = vpop.eup %3066  ;;  %v1566_v2 = vsel %vm1349_vm2, %v4160_v44, 0.0 }
 0x209   : > { %v4168_v58 = vpop.eup %3068  ;;  %v1568_v57 = vsel %vm1349_vm2, %v4164_v62, 0.0 }
 0x20a   : > { %v1553_v43 = vadd.f32 %v1552_v4, %v1551_v11  ;;  %v3071_v30 = vpop.eup %3070  ;;  %v1570_v45 = vsel %vm1349_vm2, %v4168_v58, 0.0 }
 0x20b   : > { %v4174_v35 = vpop.eup %3072  ;;  %v1572_v14 = vsel %vm1349_vm2, %v3071_v30, 0.0 }
 0x20c   : > { %v1555_v48 = vadd.f32 %v1554_v59, %v1553_v43  ;;  %v3075_v33 = vpop.eup %3074  ;;  %v1574_v3 = vsel %vm1349_vm2, %v4174_v35, 0.0 }
 0x20d   : > { %v1576_v11 = vsel %vm1349_vm2, %v3075_v33, 0.0 }
 0x20e   : > { %v1557_v51 = vadd.f32 %v1556_v36, %v1555_v48 }
 0x210   : > { %v1559_v56 = vadd.f32 %v1558_v15, %v1557_v51 }
 0x212   : > { %v1561_v52 = vadd.f32 %v1560_v9, %v1559_v56 }
 0x214   : > { %v1563_v31 = vadd.f32 %v1562_v60, %v1561_v52 }
 0x216   : > { %v1565_v53 = vadd.f32 %v1564_v32, %v1563_v31 }
 0x218   : > { %v1567_v5 = vadd.f32 %v1566_v2, %v1565_v53 }
 0x21a   : > { %v1569_v54 = vadd.f32 %v1568_v57, %v1567_v5  ;;  %v598_v5 = vld [vmem:[%s4886_s10 + $0x8] sm:$0xff] }
 0x21c   : > { %v1571_v17 = vadd.f32 %v1570_v45, %v1569_v54 }
 0x21e   : > { %v1573_v10 = vadd.f32 %v1572_v14, %v1571_v17 }
 0x220   : > { %v1575_v22 = vadd.f32 %v1574_v3, %v1573_v10  ;;  %v603_v10 = vld [vmem:[%s4886_s10 + $0x30] sm:$0xff] }
 0x222   : > { %v1577_v4 = vadd.f32 %v1576_v11, %v1575_v22 }
 0x224   : > { %v1578_v37 = vrot.slane %v1577_v4, 4 }
 0x226   : > { %v1579_v43 = vadd.f32 %v1578_v37, %v1577_v4  ;;  %v602_v37 = vld [vmem:[%s4886_s10 + $0x28] sm:$0xff] }
 0x228   : > { %v1580_v59 = vrot.slane %v1579_v43, 2 }
 0x22a   : > { %v1581_v34 = vadd.f32 %v1580_v59, %v1579_v43  ;;  %v605_v43 = vld [vmem:[%s4886_s10 + $0x40] sm:$0xff] }
 0x22c   : > { %v1582_v48 = vrot.slane %v1581_v34, 1 }
 0x22e   : > { %v1583_v36 = vadd.f32 %v1582_v48, %v1581_v34 }
 0x230   : > { %3076 = vrcp.f32 %v1583_v36 }
 0x23a   : > { %v4180_v50 = vpop.eup %3076 }
 0x23b   : > { %v1586_v51 = vmul.f32 %v4180_v50, %v4004_v40  ;;  %v1585_v15 = vmul.f32 %v4180_v50, %v4002_v24  ;;  %v1587_v46 = vmul.f32 %v4180_v50, %v4008_v63  ;;  %v1594_v56 = vmul.f32 %v4180_v50, %v4040_v6 }
 0x23c   : > { %v4191_v9 = vmul.f32 %v4180_v50, %v3071_v30  ;;  %v4194_v52 = vmul.f32 %v4180_v50, %v3075_v33  ;;  %v1588_v40 = vmul.f32 %v4180_v50, %v4012_v16  ;;  %v1596_v24 = vmul.f32 %v4180_v50, %v4054_v29  ;;  %v600_v33 = vld [vmem:[%s4886_s10 + $0x18] sm:$0xff] }
 0x23d   : > { %1624 = vperm.xlu1 %3009, %v1586_v51   ;;  %1619 = vperm.xlu0 %3008, %v1585_v15   ;;  %v1589_v63 = vmul.f32 %v4180_v50, %v4016_v26  ;;  %v1598_v6 = vmul.f32 %v4180_v50, %v4068_v61  ;;  %v1590_v60 = vmul.f32 %v4180_v50, %v4020_v13  ;;  %v604_v51 = vld [vmem:[%s4886_s10 + $0x38] sm:$0xff]  ;;  %v607_v15 = vld [vmem:[%s4886_s10 + $0x50] sm:$0xff] }
 0x23e   : > { %v1591_v16 = vmul.f32 %v4180_v50, %v4024_v27  ;;  %v1592_v29 = vmul.f32 %v4180_v50, %v4028_v19  ;;  %v1593_v26 = vmul.f32 %v4180_v50, %v4032_v20  ;;  %v1595_v61 = vmul.f32 %v4180_v50, %v4047_v23  ;;  %v597_v23 = vld [vmem:[%s4886_s10] sm:$0xff] }
 0x23f   : > { %v1597_v13 = vmul.f32 %v4180_v50, %v4061_v55  ;;  %v1599_v27 = vmul.f32 %v4180_v50, %v4075_v7  ;;  %v613_v19 = vlaneseq  ;;  %v599_v55 = vld [vmem:[%s4886_s10 + $0x10] sm:$0xff] }
 0x241   : > { %1629 = vperm.xlu1 %3009, %v1587_v46   ;;  %1664 = vperm.xlu0 %3008, %v1594_v56   ;;  %v614_v32 = vshrl.u32 %v613_v19, 7 }
 0x243   : > { %v4218_v53 = vsub.s32 0, %v614_v32 }
 0x245   : > { %1634 = vperm.xlu1 %3009, %v1588_v40   ;;  %1674 = vperm.xlu0 %3008, %v1596_v24  }
 0x249   : > { %1639 = vperm.xlu1 %3009, %v1589_v63   ;;  %1684 = vperm.xlu0 %3008, %v1598_v6   ;;  %v606_v63 = vld [vmem:[%s4886_s10 + $0x48] sm:$0xff]  ;;  %v609_v6 = vld [vmem:[%s4886_s10 + $0x60] sm:$0xff] }
 0x24d   : > { %1644 = vperm.xlu1 %3009, %v1590_v60  }
 0x251   : > { %1649 = vperm.xlu1 %3009, %v1591_v16  }
 0x255   : > { %1654 = vperm.xlu1 %3009, %v1592_v29  }
 0x259   : > { %1659 = vperm.xlu1 %3009, %v1593_v26  }
 0x25d   : > { %1669 = vperm.xlu1 %3009, %v1595_v61   ;;  %v608_v61 = vld [vmem:[%s4886_s10 + $0x58] sm:$0xff] }
 0x261   : > { %1679 = vperm.xlu1 %3009, %v1597_v13   ;;  %v611_v13 = vld [vmem:[%s4886_s10 + $0x70] sm:$0xff] }
 0x265   : > { %1689 = vperm.xlu1 %3009, %v1599_v27  }
 0x28d   : > { %v594_v31 = vpop.xlane.xlu0 %593 }
 0x28e   : > { %3078 = vrcp.f32 %v594_v31 }
 0x298   : > { %v3079_v20 = vpop.eup %3078 }
 0x299   : > { %v4221_v2 = vmul.f32 %v3079_v20, %v4101_v18  ;;  %v601_v18 = vld [vmem:[%s4886_s10 + $0x20] sm:$0xff]  ;;  %v610_v20 = vld [vmem:[%s4886_s10 + $0x68] sm:$0xff] }
 0x29b   : > { %v4231_v7 = vrot.slane %v4221_v2, %v4218_v53 }
 0x29d   : > { %v617_v57 = vmul.f32 %v4231_v7, %v597_v23  ;;  %v619_v30 = vmul.f32 %v4231_v7, %v599_v55  ;;  %v618_v17 = vmul.f32 %v4231_v7, %v598_v5  ;;  %v621_v14 = vmul.f32 %v4231_v7, %v601_v18 }
 0x29e   : > { %v620_v11 = vmul.f32 %v4231_v7, %v600_v33  ;;  %v623_v4 = vmul.f32 %v4231_v7, %v603_v10  ;;  %v622_v48 = vmul.f32 %v4231_v7, %v602_v37  ;;  %v625_v36 = vmul.f32 %v4231_v7, %v605_v43  ;;  %v4312_v37 = vld [vmem:[%s3547_s30 + $0x18] sm:$0xff] }
 0x29f   : > { %v634_v54 = vsel %vm633_vm3, %v617_v57, 0.0  ;;  %v640_v45 = vsel %vm633_vm3, %v619_v30, 0.0  ;;  %v637_v3 = vsel %vm633_vm3, %v618_v17, 0.0  ;;  %v646_v22 = vsel %vm633_vm3, %v621_v14, 0.0  ;;  %v4302_v30 = vld [vmem:[%s3547_s30 + $0x8] sm:$0xff] }
 0x2a0   : > { %635 = vadd.xlane.f32.xlu1 %v634_v54  ;;  %641 = vadd.xlane.f32.xlu0 %v640_v45  ;;  %v643_v59 = vsel %vm633_vm3, %v620_v11, 0.0  ;;  %v652_v34 = vsel %vm633_vm3, %v623_v4, 0.0  ;;  %v649_v46 = vsel %vm633_vm3, %v622_v48, 0.0  ;;  %v658_v56 = vsel %vm633_vm3, %v625_v36, 0.0  ;;  %v3215_v45 = vld [vmem:[%s3547_s30] sm:$0xff] }
 0x2a1   : > { %v624_v40 = vmul.f32 %v4231_v7, %v604_v51  ;;  %v627_v24 = vmul.f32 %v4231_v7, %v607_v15  ;;  %v626_v29 = vmul.f32 %v4231_v7, %v606_v63  ;;  %v629_v26 = vmul.f32 %v4231_v7, %v609_v6  ;;  %v4316_v48 = vld [vmem:[%s3547_s30 + $0x20] sm:$0xff]  ;;  %v4326_v6 = vld [vmem:[%s3547_s30 + $0x30] sm:$0xff] }
 0x2a2   : > { %v628_v19 = vmul.f32 %v4231_v7, %v608_v61  ;;  %v631_v32 = vmul.f32 %v4231_v7, %v611_v13  ;;  %v630_v57 = vmul.f32 %v4231_v7, %v610_v20  ;;  %v1601_v63 = vmul.f32 %v4180_v50, %v4089_v38  ;;  %v4332_v61 = vld [vmem:[%s3547_s30 + $0x38] sm:$0xff] }
 0x2a3   : > { %v655_v60 = vsel %vm633_vm3, %v624_v40, 0.0  ;;  %v664_v16 = vsel %vm633_vm3, %v627_v24, 0.0  ;;  %v661_v27 = vsel %vm633_vm3, %v626_v29, 0.0  ;;  %v670_v31 = vsel %vm633_vm3, %v629_v26, 0.0 }
 0x2a4   : > { %638 = vadd.xlane.f32.xlu1 %v637_v3  ;;  %647 = vadd.xlane.f32.xlu0 %v646_v22  ;;  %v667_v5 = vsel %vm633_vm3, %v628_v19, 0.0  ;;  %v676_v18 = vsel %vm633_vm3, %v631_v32, 0.0  ;;  %v673_v10 = vsel %vm633_vm3, %v630_v57, 0.0  ;;  %v4308_v3 = vld [vmem:[%s3547_s30 + $0x10] sm:$0xff]  ;;  %v1602_v38 = vmul.f32 %v4180_v50, %v4096_v8  ;;  %v4338_v32 = vld [vmem:[%s3547_s30 + $0x40] sm:$0xff] }
 0x2a5   : > { %v1604_v20 = vmul.f32 %v4180_v50, %v4114_v41  ;;  %v4348_v57 = vld [vmem:[%s3547_s30 + $0x50] sm:$0xff] }
 0x2a8   : > { %644 = vadd.xlane.f32.xlu1 %v643_v59  ;;  %653 = vadd.xlane.f32.xlu0 %v652_v34 }
 0x2ac   : > { %650 = vadd.xlane.f32.xlu1 %v649_v46  ;;  %659 = vadd.xlane.f32.xlu0 %v658_v56  ;;  %v4320_v46 = vld [vmem:[%s3547_s30 + $0x28] sm:$0xff] }
 0x2b0   : > { %656 = vadd.xlane.f32.xlu1 %v655_v60  ;;  %665 = vadd.xlane.f32.xlu0 %v664_v16  ;;  %v1600_v16 = vmul.f32 %v4180_v50, %v4082_v25 }
 0x2b4   : > { %662 = vadd.xlane.f32.xlu1 %v661_v27  ;;  %671 = vadd.xlane.f32.xlu0 %v670_v31 }
 0x2b8   : > { %668 = vadd.xlane.f32.xlu1 %v667_v5  ;;  %677 = vadd.xlane.f32.xlu0 %v676_v18 }
 0x2bc   : > { %v1625_v23 = vpop.permute.xlu1 %1624  ;;  %v1620_v55 = vpop.permute.xlu0 %1619  ;;  %674 = vadd.xlane.f32.xlu1 %v673_v10 }
 0x2bd   : > { %v1778_v54 = vmul.f32 %v4302_v30, %v1625_v23  ;;  %v1777_v17 = vmul.f32 %v3215_v45, %v1620_v55  ;;  %v4344_v23 = vld [vmem:[%s3547_s30 + $0x48] sm:$0xff] }
 0x2bf   : > { %v1809_v14 = vadd.f32 %v1778_v54, %v1777_v17  ;;  %v1606_v17 = vmul.f32 %v4180_v50, %v4128_v39  ;;  %v1610_v39 = vmul.f32 %v4180_v50, %v4156_v12  ;;  %v1603_v12 = vmul.f32 %v4180_v50, %v4105_v28 }
 0x2c0   : > { %v1630_v33 = vpop.permute.xlu1 %1629  ;;  %v1665_v27 = vpop.permute.xlu0 %1664  ;;  %v1609_v28 = vmul.f32 %v4180_v50, %v4149_v47 }
 0x2c1   : > { %v1779_v22 = vmul.f32 %v4308_v3, %v1630_v33  ;;  %v1786_v55 = vmul.f32 %v4344_v23, %v1665_v27 }
 0x2c3   : > { %v1810_v11 = vadd.f32 %v1809_v14, %v1779_v22  ;;  %v4354_v14 = vld [vmem:[%s3547_s30 + $0x58] sm:$0xff]  ;;  %v4358_v22 = vld [vmem:[%s3547_s30 + $0x60] sm:$0xff] }
 0x2c4   : > { %v1635_v4 = vpop.permute.xlu1 %1634  ;;  %v1675_v8 = vpop.permute.xlu0 %1674 }
 0x2c5   : > { %v1780_v43 = vmul.f32 %v4312_v37, %v1635_v4  ;;  %v1788_v41 = vmul.f32 %v4354_v14, %v1675_v8 }
 0x2c7   : > { %v1811_v59 = vadd.f32 %v1810_v11, %v1780_v43  ;;  %v1608_v43 = vmul.f32 %v4180_v50, %v4142_v49 }
 0x2c8   : > { %v1640_v34 = vpop.permute.xlu1 %1639 }
 0x2c9   : > { %v1781_v36 = vmul.f32 %v4316_v48, %v1640_v34  ;;  %v1612_v34 = vmul.f32 %v4180_v50, %v4164_v62  ;;  %v1605_v62 = vmul.f32 %v4180_v50, %v4121_v42  ;;  %v1611_v42 = vmul.f32 %v4180_v50, %v4160_v44 }
 0x2cb   : > { %v1812_v51 = vadd.f32 %v1811_v59, %v1781_v36  ;;  %v612_v36 = vld [vmem:[%s4886_s10 + $0x78] sm:$0xff] }
 0x2cc   : > { %v1645_v15 = vpop.permute.xlu1 %1644 }
 0x2cd   : > { %v1782_v56 = vmul.f32 %v4320_v46, %v1645_v15  ;;  %1699 = vperm.xlu1 %3009, %v1601_v63   ;;  %v682_v15 = vld [vmem:[%s4887_s11] sm:$0x1] }
 0x2ce   : > { %1694 = vperm.xlu0 %3008, %v1600_v16  }
 0x2cf   : > { %v1813_v40 = vadd.f32 %v1812_v51, %v1782_v56  ;;  %v632_v51 = vmul.f32 %v4231_v7, %v612_v36  ;;  %v1613_v56 = vmul.f32 %v4180_v50, %v4168_v58 }
 0x2d0   : > { %v1650_v24 = vpop.permute.xlu1 %1649 }
 0x2d1   : > { %v1783_v60 = vmul.f32 %v4326_v6, %v1650_v24  ;;  %v679_v49 = vsel %vm633_vm3, %v632_v51, 0.0 }
 0x2d2   : > { %1704 = vperm.xlu0 %3008, %v1602_v38  }
 0x2d3   : > { %v1814_v29 = vadd.f32 %v1813_v40, %v1783_v60 }
 0x2d4   : > { %v1655_v26 = vpop.permute.xlu1 %1654 }
 0x2d5   : > { %v1784_v13 = vmul.f32 %v4332_v61, %v1655_v26 }
 0x2d6   : > { %1714 = vperm.xlu0 %3008, %v1604_v20  }
 0x2d7   : > { %v1815_v31 = vadd.f32 %v1814_v29, %v1784_v13 }
 0x2d8   : > { %v1660_v19 = vpop.permute.xlu1 %1659 }
 0x2d9   : > { %v1785_v25 = vmul.f32 %v4338_v32, %v1660_v19 }
 0x2da   : > { %1724 = vperm.xlu0 %3008, %v1606_v17  }
 0x2db   : > { %v1816_v5 = vadd.f32 %v1815_v31, %v1785_v25 }
 0x2dc   : > { %v1670_v18 = vpop.permute.xlu1 %1669 }
 0x2dd   : > { %v1787_v54 = vmul.f32 %v4348_v57, %v1670_v18  ;;  %v1817_v45 = vadd.f32 %v1816_v5, %v1786_v55 }
 0x2de   : > { %1734 = vperm.xlu0 %3008, %v1608_v43  }
 0x2df   : > { %v1818_v33 = vadd.f32 %v1817_v45, %v1787_v54  ;;  %v4396_v45 = vld [vmem:[%s3547_s30 + $0x68] sm:$0xff] }
 0x2e0   : > { %v1680_v10 = vpop.permute.xlu1 %1679 }
 0x2e1   : > { %v1789_v11 = vmul.f32 %v4358_v22, %v1680_v10  ;;  %v1819_v4 = vadd.f32 %v1818_v33, %v1788_v41  ;;  %v4400_v41 = vld [vmem:[%s3547_s30 + $0x70] sm:$0xff] }
 0x2e2   : > { %1744 = vperm.xlu0 %3008, %v1610_v39  }
 0x2e3   : > { %v4363_v59 = vadd.f32 %v1819_v4, %v1789_v11  ;;  %v4405_v4 = vld [vmem:[%s3547_s30 + $0x78] sm:$0xff] }
 0x2e4   : > { %v1690_v40 = vpop.permute.xlu1 %1689 }
 0x2e5   : > { %v1791_v33 = vmul.f32 %v4400_v41, %v1690_v40  ;;  %v4423_v40 = vld [vmem:[%s3547_s30 + $0x90] sm:$0xff] }
 0x2e6   : > { %1754 = vperm.xlu0 %3008, %v1612_v34  }
 0x2ea   : > { %1764 = vperm.xlu0 %3008, %v4191_v9   ;;  %v1607_v9 = vmul.f32 %v4180_v50, %v4135_v21  ;;  %v1615_v21 = vmul.f32 %v4180_v50, %v4174_v35 }
 0x2ee   : > { %1774 = vperm.xlu0 %3008, %v4194_v52   ;;  %v683_v52 = vmul.f32 %v682_v15, %v4221_v2  ;;  %v1685_v2 = vpop.permute.xlu0 %1684 }
 0x2ef   : > { %v1790_v17 = vmul.f32 %v4396_v45, %v1685_v2 }
 0x2f0   : > { %v684_v7 = vsel %vm585_vm1, %v683_v52, 0.0 }
 0x2f1   : > { %680 = vadd.xlane.f32.xlu1 %v679_v49  ;;  %v1821_v10 = vadd.f32 %v4363_v59, %v1790_v17  ;;  %v4409_v49 = vld [vmem:[%s3547_s30 + $0x80] sm:$0xff] }
 0x2f3   : > { %v1822_v39 = vadd.f32 %v1821_v10, %v1791_v33 }
 0x302   : > { %1709 = vperm.xlu1 %3009, %v1603_v12  }
 0x306   : > { %1719 = vperm.xlu1 %3009, %v1605_v62  }
 0x30a   : > { %1729 = vperm.xlu1 %3009, %v1607_v9   ;;  %v4413_v9 = vld [vmem:[%s3547_s30 + $0x88] sm:$0xff] }
 0x30d   : > { %685 = vadd.xlane.f32.xlu0 %v684_v7  ;;  %v1846_v7 = vld [vmem:[%s4878_s2] sm:$0xff] }
 0x30e   : > { %1739 = vperm.xlu1 %3009, %v1609_v28   ;;  %v1847_v28 = vld [vmem:[%s4878_s2 + $0x8] sm:$0xff] }
 0x312   : > { %1749 = vperm.xlu1 %3009, %v1611_v42  }
 0x316   : > { %1759 = vperm.xlu1 %3009, %v1613_v56  }
 0x31a   : > { %1769 = vperm.xlu1 %3009, %v1615_v21   ;;  %v2915_v21 = vpack.c.bf16 %v1847_v28, %v1846_v7  ;;  %v1856_v7 = vld [vmem:[%s4878_s2 + $0x50] sm:$0xff]  ;;  %v1857_v28 = vld [vmem:[%s4878_s2 + $0x58] sm:$0xff] }
 0x32d   : > { %v636_v24 = vpop.xlane.xlu1 %635  ;;  %v642_v63 = vpop.xlane.xlu0 %641 }
 0x331   : > { %v639_v60 = vpop.xlane.xlu1 %638  ;;  %v648_v47 = vpop.xlane.xlu0 %647 }
 0x332   : > { %v2850_v16 = vpack.c.bf16 %v639_v60, %v636_v24  ;;  %v1849_v60 = vld [vmem:[%s4878_s2 + $0x18] sm:$0xff] }
 0x334   : > { %2851 = vmatprep.subr.bf16.mxu1 %v2850_v16 }
 0x335   : > { %2853 = vmatpush3.bf16.msra.mxu1 %v2850_v16  ;;  %v645_v29 = vpop.xlane.xlu1 %644  ;;  %v654_v26 = vpop.xlane.xlu0 %653 }
 0x336   : > { %v2854_v44 = vpack.c.bf16 %v645_v29, %v642_v63  ;;  %v1848_v63 = vld [vmem:[%s4878_s2 + $0x10] sm:$0xff] }
 0x338   : > { %2855 = vmatprep.subr.bf16.mxu1 %v2854_v44 }
 0x339   : > { %v651_v13 = vpop.xlane.xlu1 %650  ;;  %2857 = vmatpush3.bf16.msra.mxu1 %v2854_v44  ;;  %v660_v38 = vpop.xlane.xlu0 %659 }
 0x33a   : > { %v2858_v58 = vpack.c.bf16 %v651_v13, %v648_v47  ;;  %v4434_v47 = vld [vmem:[%s3547_s30 + $0x98] sm:$0xff]  ;;  %v4440_v13 = vld [vmem:[%s3547_s30 + $0xa0] sm:$0xff] }
 0x33c   : > { %2859 = vmatprep.subr.bf16.mxu1 %v2858_v58 }
 0x33d   : > { %v657_v35 = vpop.xlane.xlu1 %656  ;;  %2861 = vmatpush3.bf16.msra.mxu1 %v2858_v58  ;;  %v666_v19 = vpop.xlane.xlu0 %665 }
 0x33e   : > { %v2862_v50 = vpack.c.bf16 %v657_v35, %v654_v26  ;;  %v2918_v26 = vpack.c.bf16 %v1849_v60, %v1848_v63  ;;  %v1850_v35 = vld [vmem:[%s4878_s2 + $0x20] sm:$0xff] }
 0x33f   : > { %v3242_v63 = vld [vmem:[%s3547_s30 + $0xe0] sm:$0xff] }
 0x340   : > { %2863 = vmatprep.subr.bf16.mxu1 %v2862_v50 }
 0x341   : > { %v663_v27 = vpop.xlane.xlu1 %662  ;;  %2865 = vmatpush3.bf16.msra.mxu1 %v2862_v50  ;;  %v672_v55 = vpop.xlane.xlu0 %671 }
 0x342   : > { %v2866_v31 = vpack.c.bf16 %v663_v27, %v660_v38 }
 0x344   : > { %2867 = vmatprep.subr.bf16.mxu1 %v2866_v31 }
 0x345   : > { %v669_v25 = vpop.xlane.xlu1 %668  ;;  %2869 = vmatpush3.bf16.msra.mxu1 %v2866_v31  ;;  %v678_v18 = vpop.xlane.xlu0 %677 }
 0x346   : > { %v2870_v20 = vpack.c.bf16 %v669_v25, %v666_v19 }
 0x348   : > { %2871 = vmatprep.subr.bf16.mxu1 %v2870_v20 }
 0x349   : > { %v675_v5 = vpop.xlane.xlu1 %674  ;;  %2873 = vmatpush3.bf16.msra.mxu1 %v2870_v20  ;;  %v4457_v20 = vld [vmem:[%s3547_s30 + $0xb0] sm:$0xff] }
 0x34a   : > { %v2874_v8 = vpack.c.bf16 %v675_v5, %v672_v55 }
 0x34c   : > { %2875 = vmatprep.subr.bf16.mxu1 %v2874_v8 }
 0x34d   : > { %2877 = vmatpush3.bf16.msra.mxu1 %v2874_v8  ;;  %v1695_v54 = vpop.permute.xlu0 %1694  ;;  %v1700_v34 = vpop.permute.xlu1 %1699  ;;  %v1852_v8 = vld [vmem:[%s4878_s2 + $0x30] sm:$0xff] }
 0x34e   : > { %v1792_v43 = vmul.f32 %v4405_v4, %v1695_v54  ;;  %v1793_v12 = vmul.f32 %v4409_v49, %v1700_v34  ;;  %v1854_v34 = vld [vmem:[%s4878_s2 + $0x40] sm:$0xff] }
 0x350   : > { %v1823_v36 = vadd.f32 %v1822_v39, %v1792_v43 }
 0x351   : > { %v1705_v11 = vpop.permute.xlu0 %1704 }
 0x352   : > { %v1824_v15 = vadd.f32 %v1823_v36, %v1793_v12  ;;  %v1794_v59 = vmul.f32 %v4413_v9, %v1705_v11  ;;  %v4474_v11 = vld [vmem:[%s3547_s30 + $0xc0] sm:$0xff]  ;;  %v4485_v36 = vld [vmem:[%s3547_s30 + $0xc8] sm:$0xff] }
 0x354   : > { %v1825_v2 = vadd.f32 %v1824_v15, %v1794_v59  ;;  %v3240_v15 = vld [vmem:[%s3547_s30 + $0xd0] sm:$0xff] }
 0x355   : > { %v1715_v51 = vpop.permute.xlu0 %1714 }
 0x356   : > { %v1796_v16 = vmul.f32 %v4434_v47, %v1715_v51 }
 0x359   : > { %v1725_v42 = vpop.permute.xlu0 %1724 }
 0x35d   : > { %v1735_v50 = vpop.permute.xlu0 %1734 }
 0x361   : > { %v1745_v17 = vpop.permute.xlu0 %1744 }
 0x37e   : > { %v681_v62 = vpop.xlane.xlu1 %680 }
 0x37f   : > { %v2878_v52 = vpack.c.bf16 %v681_v62, %v678_v18 }
 0x381   : > { %2879 = vmatprep.subr.bf16.mxu1 %v2878_v52 }
 0x382   : > { %v1710_v56 = vpop.permute.xlu1 %1709  ;;  %2881 = vmatpush3.bf16.msra.mxu1 %v2878_v52 }
 0x383   : > { %v1795_v24 = vmul.f32 %v4423_v40, %v1710_v56  ;;  %2914 = vmatprep.subr.bf16.mxu1 %v3372_v0  ;;  %v1858_v56 = vld [vmem:[%s4878_s2 + $0x60] sm:$0xff] }
 0x385   : > { %v1826_v29 = vadd.f32 %v1825_v2, %v1795_v24  ;;  %2645 = vmatmul.mubr.f32.vlgmr.msra.gmra.mrb[0].mxu1 %v4302_v30  ;;  %v1851_v30 = vld [vmem:[%s4878_s2 + $0x28] sm:$0xff]  ;;  %v4508_v24 = vld [vmem:[%s3547_s30 + $0xd8] sm:$0xff] }
 0x386   : > { %v1720_v44 = vpop.permute.xlu1 %1719  ;;  %2916 = vmatpush3.bf16.msra.mxu1 %v2915_v21  ;;  %2647 = vmatprep.mubr.f32.mxu1 %v4308_v3  ;;  %v4451_v3 = vld [vmem:[%s3547_s30 + $0xa8] sm:$0xff]  ;;  %v2921_v25 = vpack.c.bf16 %v1851_v30, %v1850_v35 }
 0x387   : > { %v1797_v58 = vmul.f32 %v4440_v13, %v1720_v44  ;;  %v1827_v38 = vadd.f32 %v1826_v29, %v1796_v16  ;;  %2917 = vmatprep.subr.bf16.mxu1 %v3372_v0  ;;  %v1798_v27 = vmul.f32 %v4451_v3, %v1725_v42  ;;  %v1859_v21 = vld [vmem:[%s4878_s2 + $0x68] sm:$0xff]  ;;  %v1860_v29 = vld [vmem:[%s4878_s2 + $0x70] sm:$0xff]  ;;  %v1861_v44 = vld [vmem:[%s4878_s2 + $0x78] sm:$0xff] }
 0x389   : > { %v1828_v31 = vadd.f32 %v1827_v38, %v1797_v58  ;;  %2648 = vmatmul.mubr.f32.gmra.mrb[2].mxu1 %v4312_v37  ;;  %v1853_v37 = vld [vmem:[%s4878_s2 + $0x38] sm:$0xff]  ;;  %v4525_v38 = vld [vmem:[%s3547_s30 + $0xe8] sm:$0xff] }
 0x38a   : > { %v1730_v19 = vpop.permute.xlu1 %1729  ;;  %2650 = vmatprep.mubr.f32.mxu1 %v4316_v48  ;;  %2919 = vmatpush3.bf16.msra.mxu1 %v2918_v26  ;;  %v4468_v48 = vld [vmem:[%s3547_s30 + $0xb8] sm:$0xff]  ;;  %v2924_v10 = vpack.c.bf16 %v1853_v37, %v1852_v8 }
 0x38b   : > { %v1799_v55 = vmul.f32 %v4457_v20, %v1730_v19  ;;  %v1829_v5 = vadd.f32 %v1828_v31, %v1798_v27  ;;  %2920 = vmatprep.subr.bf16.mxu1 %v3372_v0  ;;  %v1800_v18 = vmul.f32 %v4468_v48, %v1735_v50  ;;  %v4538_v31 = vld [vmem:[%s3547_s30 + $0xf8] sm:$0xff] }
 0x38c   : > { %v1936_v8 = vld [vmem:[#allocation2 + $0x18] sm:$0xff] }
 0x38d   : > { %v1830_v54 = vadd.f32 %v1829_v5, %v1799_v55  ;;  %2651 = vmatmul.mubr.f32.gmra.mrb[4].mxu1 %v4320_v46  ;;  %v1855_v46 = vld [vmem:[%s4878_s2 + $0x48] sm:$0xff]  ;;  %v1935_v5 = vld [vmem:[#allocation2 + $0x10] sm:$0xff] }
 0x38e   : > { %v1740_v33 = vpop.permute.xlu1 %1739  ;;  %2653 = vmatprep.mubr.f32.mxu1 %v4326_v6  ;;  %2922 = vmatpush3.bf16.msra.mxu1 %v2921_v25  ;;  %v1802_v6 = vmul.f32 %v4485_v36, %v1745_v17  ;;  %v2927_v62 = vpack.c.bf16 %v1855_v46, %v1854_v34  ;;  %v1933_v25 = vld [vmem:[#allocation2] sm:$0xff]  ;;  %v2942_v37 = vpack.c.bf16 %v1936_v8, %v1935_v5  ;;  %v1939_v17 = vld [vmem:[#allocation2 + $0x30] sm:$0xff] }
 0x38f   : > { %v1801_v43 = vmul.f32 %v4474_v11, %v1740_v33  ;;  %v1831_v39 = vadd.f32 %v1830_v54, %v1800_v18  ;;  %2923 = vmatprep.subr.bf16.mxu1 %v3372_v0  ;;  %v1938_v18 = vld [vmem:[#allocation2 + $0x28] sm:$0xff]  ;;  %v1940_v33 = vld [vmem:[#allocation2 + $0x38] sm:$0xff] }
 0x391   : > { %v1832_v51 = vadd.f32 %v1831_v39, %v1801_v43  ;;  %2654 = vmatmul.mubr.f32.gmra.mrb[6].mxu1 %v4332_v61  ;;  %v1755_v61 = vpop.permute.xlu0 %1754 }
 0x392   : > { %v1750_v12 = vpop.permute.xlu1 %1749  ;;  %2656 = vmatprep.mubr.f32.mxu1 %v4338_v32  ;;  %2925 = vmatpush3.bf16.msra.mxu1 %v2924_v10  ;;  %v2930_v32 = vpack.c.bf16 %v1857_v28, %v1856_v7 }
 0x393   : > { %v1803_v59 = vmul.f32 %v3240_v15, %v1750_v12  ;;  %v1833_v52 = vadd.f32 %v1832_v51, %v1802_v6  ;;  %2926 = vmatprep.subr.bf16.mxu1 %v3372_v0 }
 0x395   : > { %2657 = vmatmul.mubr.f32.gmra.mrb[8].mxu1 %v4344_v23  ;;  %v1834_v42 = vadd.f32 %v1833_v52, %v1803_v59  ;;  %v1804_v23 = vmul.f32 %v4508_v24, %v1755_v61 }
 0x396   : > { %2659 = vmatprep.mubr.f32.mxu1 %v4348_v57  ;;  %2928 = vmatpush3.bf16.msra.mxu1 %v2927_v62  ;;  %v1760_v2 = vpop.permute.xlu1 %1759  ;;  %v2933_v57 = vpack.c.bf16 %v1859_v21, %v1858_v56 }
 0x397   : > { %2929 = vmatprep.subr.bf16.mxu1 %v3372_v0  ;;  %v1805_v60 = vmul.f32 %v3242_v63, %v1760_v2  ;;  %v1835_v16 = vadd.f32 %v1834_v42, %v1804_v23 }
 0x399   : > { %2660 = vmatmul.mubr.f32.gmra.mrb[10].mxu1 %v4354_v14  ;;  %v1765_v14 = vpop.permute.xlu0 %1764  ;;  %v1836_v26 = vadd.f32 %v1835_v16, %v1805_v60 }
 0x39a   : > { %2662 = vmatprep.mubr.f32.mxu1 %v4358_v22  ;;  %2931 = vmatpush3.bf16.msra.mxu1 %v2930_v32  ;;  %v2936_v22 = vpack.c.bf16 %v1861_v44, %v1860_v29  ;;  %v1770_v58 = vpop.permute.xlu1 %1769  ;;  %v1806_v35 = vmul.f32 %v4525_v38, %v1765_v14 }
 0x39b   : > { %2932 = vmatprep.subr.bf16.mxu1 %v3372_v0 }
 0x39c   : > { %v1837_v30 = vadd.f32 %v1836_v26, %v1806_v35 }
 0x39d   : > { %2663 = vmatmul.mubr.f32.gmra.mrb[12].mxu1 %v4396_v45  ;;  %v4531_v45 = vld [vmem:[%s3547_s30 + $0xf0] sm:$0xff]  ;;  %v1775_v50 = vpop.permute.xlu0 %1774 }
 0x39e   : > { %2665 = vmatprep.mubr.f32.mxu1 %v4400_v41  ;;  %2934 = vmatpush3.bf16.msra.mxu1 %v2933_v57  ;;  %v1807_v41 = vmul.f32 %v4531_v45, %v1770_v58 }
 0x39f   : > { %2935 = vmatprep.subr.bf16.mxu1 %v3372_v0 }
 0x3a0   : > { %v1838_v27 = vadd.f32 %v1837_v30, %v1807_v41 }
 0x3a1   : > { %2666 = vmatmul.mubr.f32.gmra.mrb[14].mxu1 %v4405_v4  ;;  %v1808_v4 = vmul.f32 %v4538_v31, %v1775_v50  ;;  %v686_v10 = vpop.xlane.xlu0 %685 }
 0x3a2   : > { %2668 = vmatprep.mubr.f32.mxu1 %v4409_v49  ;;  %2937 = vmatpush3.bf16.msra.mxu1 %v2936_v22 }
 0x3a3   : > { %2938 = vmatprep.subr.bf16.mxu1 %v3372_v0  ;;  %v1839_v49 = vadd.f32 %v1838_v27, %v1808_v4 }
 0x3a5   : > { %2669 = vmatmul.mubr.f32.gmra.mrb[16].mxu1 %v4413_v9  ;;  %v1840_v19 = vrot.slane %v1839_v49, 4 }
 0x3a6   : > { %2671 = vmatprep.mubr.f32.mxu1 %v4423_v40 }
 0x3a7   : > { %v1841_v9 = vadd.f32 %v1840_v19, %v1839_v49 }
 0x3a9   : > { %2672 = vmatmul.mubr.f32.gmra.mrb[18].mxu1 %v4434_v47  ;;  %v1842_v40 = vrot.slane %v1841_v9, 2 }
 0x3aa   : > { %2674 = vmatprep.mubr.f32.mxu1 %v4440_v13 }
 0x3ab   : > { %v1843_v47 = vadd.f32 %v1842_v40, %v1841_v9 }
 0x3ad   : > { %2675 = vmatmul.mubr.f32.gmra.mrb[20].mxu1 %v4451_v3  ;;  %v1844_v13 = vrot.slane %v1843_v47, 1 }
 0x3ae   : > { %2677 = vmatprep.mubr.f32.mxu1 %v4457_v20  ;;  %v1934_v20 = vld [vmem:[#allocation2 + $0x8] sm:$0xff] }
 0x3af   : > { %v1845_v3 = vadd.f32 %v1844_v13, %v1843_v47  ;;  %v2939_v55 = vpack.c.bf16 %v1934_v20, %v1933_v25 }
 0x3b1   : > { %2678 = vmatmul.mubr.f32.gmra.mrb[22].mxu1 %v4468_v48  ;;  %v1937_v48 = vld [vmem:[#allocation2 + $0x20] sm:$0xff] }
 0x3b2   : > { %2680 = vmatprep.mubr.f32.mxu1 %v4474_v11  ;;  %v2945_v54 = vpack.c.bf16 %v1938_v18, %v1937_v48  ;;  %v4560_v11 = vrot.slane %v686_v10, %v4218_v53 }
 0x3b5   : > { %2681 = vmatmul.mubr.f32.gmra.mrb[24].mxu1 %v4485_v36 }
 0x3b6   : > { %2683 = vmatprep.mubr.f32.mxu1 %v3240_v15 }
 0x3b9   : > { %2684 = vmatmul.mubr.f32.gmra.mrb[26].mxu1 %v4508_v24 }
 0x3ba   : > { %2686 = vmatprep.mubr.f32.mxu1 %v3242_v63 }
 0x3bd   : > { %2687 = vmatmul.mubr.f32.gmra.mrb[28].mxu1 %v4525_v38 }
 0x3be   : > { %2689 = vmatprep.mubr.f32.mxu1 %v4531_v45 }
 0x3c1   : > { %2690 = vmatmul.mubr.f32.gmra.mrb[30].mxu1 %v4538_v31 }
 0x3c2   : > { %2804 = vmatprep.mubr.msk.f32.mxu1 %vm3373_vm0, %v3374_v1 }
 0x3c5   : > { %2805 = vmatmul.mubr.f32.vlgmr.msra.gmra.mrb[32].mxu1 %v1845_v3 }
 0x3c6   : > { %2823 = vmatprep.mubr.msk.f32.mxu1 %vm3373_vm0, %v3374_v1  ;;  %2940 = vmatpush3.bf16.msra.mxu1 %v2939_v55  ;;  %v2948_v1 = vpack.c.bf16 %v1940_v33, %v1939_v17 }
 0x3c7   : > { %2941 = vmatprep.subr.bf16.mxu1 %v3372_v0 }
 0x3ca   : > { %2943 = vmatpush3.bf16.msra.mxu1 %v2942_v37 }
 0x3cb   : > { %2944 = vmatprep.subr.bf16.mxu1 %v3372_v0 }
 0x3ce   : > { %2946 = vmatpush3.bf16.msra.mxu1 %v2945_v54 }
 0x3cf   : > { %2947 = vmatprep.subr.bf16.mxu1 %v3372_v0 }
 0x3d2   : > { %2949 = vmatpush3.bf16.msra.mxu1 %v2948_v1 }
 0x458   : > { %v2646_v43 = vpop.f32.mrb[0].mxu1 }
 0x459   : > { %v763_v39 = vadd.f32 %v2646_v43, %v4560_v11  ;;  %v757_v34 = vpop.f32.mrb[1].mxu1 }
 0x45a   : > { %v4564_v46 = vadd.f32 %v757_v34, %v4560_v11 }
 0x45b   : > { %v2398_v6 = vmul.f32 -1.442695, %v763_v39 }
 0x45c   : > { %v2649_v51 = vpop.f32.mrb[2].mxu1 }
 0x45d   : > { %3080 = vpow2.f32 %v2398_v6  ;;  %v4567_v12 = vadd.f32 %v2649_v51, %v4560_v11  ;;  %v767_v0 = vpop.f32.mrb[3].mxu1 }
 0x45e   : > { %v4570_v62 = vadd.f32 %v767_v0, %v4560_v11 }
 0x460   : > { %v2652_v15 = vpop.f32.mrb[4].mxu1 }
 0x461   : > { %v4573_v59 = vadd.f32 %v2652_v15, %v4560_v11  ;;  %v777_v52 = vpop.f32.mrb[5].mxu1 }
 0x462   : > { %v778_v7 = vadd.f32 %v777_v52, %v4560_v11 }
 0x464   : > { %v2401_v28 = vmul.f32 -1.442695, %v778_v7  ;;  %v2655_v61 = vpop.f32.mrb[6].mxu1 }
 0x465   : > { %v4577_v32 = vadd.f32 %v2655_v61, %v4560_v11  ;;  %v787_v42 = vpop.f32.mrb[7].mxu1 }
 0x466   : > { %3082 = vpow2.f32 %v2401_v28  ;;  %v788_v56 = vadd.f32 %v787_v42, %v4560_v11 }
 0x467   : > { %v3081_v21 = vpop.eup %3080 }
 0x468   : > { %v1013_v2 = vadd.f32 1.0, %v3081_v21  ;;  %v2403_v23 = vmul.f32 -1.442695, %v788_v56  ;;  %v2658_v57 = vpop.f32.mrb[8].mxu1 }
 0x469   : > { %v4581_v63 = vadd.f32 %v2658_v57, %v4560_v11  ;;  %v797_v60 = vpop.f32.mrb[9].mxu1 }
 0x46a   : > { %3084 = vrcp.f32 %v1013_v2  ;;  %v798_v16 = vadd.f32 %v797_v60, %v4560_v11 }
 0x46b   : > { %3086 = vpow2.f32 %v2403_v23 }
 0x46c   : > { %v2405_v29 = vmul.f32 -1.442695, %v798_v16  ;;  %v2661_v44 = vpop.f32.mrb[10].mxu1 }
 0x46d   : > { %v4585_v14 = vadd.f32 %v2661_v44, %v4560_v11  ;;  %v807_v22 = vpop.f32.mrb[11].mxu1 }
 0x46e   : > { %v808_v26 = vadd.f32 %v807_v22, %v4560_v11  ;;  %3088 = vpow2.f32 %v2405_v29 }
 0x470   : > { %v3083_v58 = vpop.eup %3082  ;;  %v2407_v35 = vmul.f32 -1.442695, %v808_v26  ;;  %v2664_v41 = vpop.f32.mrb[12].mxu1 }
 0x471   : > { %v1016_v30 = vadd.f32 1.0, %v3083_v58  ;;  %v4589_v50 = vadd.f32 %v2664_v41, %v4560_v11  ;;  %v817_v27 = vpop.f32.mrb[13].mxu1 }
 0x472   : > { %v818_v4 = vadd.f32 %v817_v27, %v4560_v11 }
 0x473   : > { %3090 = vrcp.f32 %v1016_v30 }
 0x474   : > { %v3085_v49 = vpop.eup %3084  ;;  %3092 = vpow2.f32 %v2407_v35  ;;  %v2409_v19 = vmul.f32 -1.442695, %v818_v4  ;;  %v2667_v9 = vpop.f32.mrb[14].mxu1 }
 0x475   : > { %v4593_v40 = vadd.f32 %v2667_v9, %v4560_v11  ;;  %v827_v47 = vpop.f32.mrb[15].mxu1  ;;  %2051 = vperm.xlu0 %3008, %v3085_v49   ;;  %v3087_v13 = vpop.eup %3086 }
 0x476   : > { %v828_v3 = vadd.f32 %v827_v47, %v4560_v11  ;;  %v1018_v25 = vadd.f32 1.0, %v3087_v13  ;;  %3094 = vpow2.f32 %v2409_v19 }
 0x478   : > { %v2411_v20 = vmul.f32 -1.442695, %v828_v3  ;;  %v2670_v55 = vpop.f32.mrb[16].mxu1  ;;  %3096 = vrcp.f32 %v1018_v25  ;;  %v3089_v37 = vpop.eup %3088  ;;  %v1862_v25 = vld [vmem:[%s4879_s3] sm:$0x1] }
 0x479   : > { %v4597_v5 = vadd.f32 %v2670_v55, %v4560_v11  ;;  %v837_v8 = vpop.f32.mrb[17].mxu1  ;;  %v1020_v18 = vadd.f32 1.0, %v3089_v37  ;;  %v2397_v37 = vmul.f32 -1.442695, %v4564_v46 }
 0x47a   : > { %v4600_v48 = vadd.f32 %v837_v8, %v4560_v11  ;;  %3098 = vpow2.f32 %v2411_v20 }
 0x47b   : > { %3100 = vrcp.f32 %v1020_v18  ;;  %v2399_v18 = vmul.f32 -1.442695, %v4570_v62 }
 0x47c   : > { %v2673_v54 = vpop.f32.mrb[18].mxu1 }
 0x47d   : > { %v3091_v17 = vpop.eup %3090  ;;  %v4603_v33 = vadd.f32 %v2673_v54, %v4560_v11  ;;  %v847_v1 = vpop.f32.mrb[19].mxu1  ;;  %v2400_v54 = vmul.f32 -1.442695, %v4567_v12  ;;  %v2404_v12 = vmul.f32 -1.442695, %v4577_v32 }
 0x47e   : > { %v3093_v10 = vpop.eup %3092  ;;  %v4606_v43 = vadd.f32 %v847_v1, %v4560_v11  ;;  %2066 = vperm.xlu0 %3008, %v3091_v17   ;;  %v2402_v1 = vmul.f32 -1.442695, %v4573_v59  ;;  %v2408_v59 = vmul.f32 -1.442695, %v4585_v14  ;;  %v2414_v14 = vmul.f32 -1.442695, %v4597_v5 }
 0x47f   : > { %v1022_v39 = vadd.f32 1.0, %v3093_v10 }
 0x480   : > { %v2676_v34 = vpop.f32.mrb[20].mxu1  ;;  %v3095_v6 = vpop.eup %3094 }
 0x481   : > { %3102 = vrcp.f32 %v1022_v39  ;;  %v4609_v51 = vadd.f32 %v2676_v34, %v4560_v11  ;;  %v857_v0 = vpop.f32.mrb[21].mxu1  ;;  %v1024_v15 = vadd.f32 1.0, %v3095_v6 }
 0x482   : > { %v4612_v52 = vadd.f32 %v857_v0, %v4560_v11  ;;  %v3097_v7 = vpop.eup %3096  ;;  %v2406_v0 = vmul.f32 -1.442695, %v4581_v63 }
 0x483   : > { %3104 = vrcp.f32 %v1024_v15  ;;  %2076 = vperm.xlu0 %3008, %v3097_v7  }
 0x484   : > { %v2679_v28 = vpop.f32.mrb[22].mxu1  ;;  %v3099_v56 = vpop.eup %3098 }
 0x485   : > { %v4615_v61 = vadd.f32 %v2679_v28, %v4560_v11  ;;  %v867_v42 = vpop.f32.mrb[23].mxu1  ;;  %v3101_v2 = vpop.eup %3100  ;;  %v1026_v23 = vadd.f32 1.0, %v3099_v56  ;;  %v2410_v56 = vmul.f32 -1.442695, %v4589_v50 }
 0x486   : > { %v4618_v21 = vadd.f32 %v867_v42, %v4560_v11 }
 0x487   : > { %2086 = vperm.xlu0 %3008, %v3101_v2   ;;  %3106 = vrcp.f32 %v1026_v23 }
 0x488   : > { %v2682_v57 = vpop.f32.mrb[24].mxu1  ;;  %3108 = vpow2.f32 %v2397_v37 }
 0x489   : > { %v4621_v60 = vadd.f32 %v2682_v57, %v4560_v11  ;;  %v877_v16 = vpop.f32.mrb[25].mxu1  ;;  %3110 = vpow2.f32 %v2399_v18  ;;  %v2412_v57 = vmul.f32 -1.442695, %v4593_v40 }
 0x48a   : > { %v4624_v29 = vadd.f32 %v877_v16, %v4560_v11  ;;  %3112 = vpow2.f32 %v2400_v54 }
 0x48b   : > { %v3103_v44 = vpop.eup %3102  ;;  %3114 = vpow2.f32 %v2402_v1 }
 0x48c   : > { %2096 = vperm.xlu0 %3008, %v3103_v44   ;;  %v2685_v22 = vpop.f32.mrb[26].mxu1  ;;  %3116 = vpow2.f32 %v2404_v12 }
 0x48d   : > { %v4627_v26 = vadd.f32 %v2685_v22, %v4560_v11  ;;  %v887_v58 = vpop.f32.mrb[27].mxu1  ;;  %v3105_v35 = vpop.eup %3104 }
 0x48e   : > { %v4630_v41 = vadd.f32 %v887_v58, %v4560_v11 }
 0x48f   : > { %v2424_v54 = vmul.f32 -1.442695, %v4627_v26 }
 0x490   : > { %2106 = vperm.xlu0 %3008, %v3105_v35   ;;  %v2688_v30 = vpop.f32.mrb[28].mxu1  ;;  %v2416_v35 = vmul.f32 -1.442695, %v4603_v33 }
 0x491   : > { %v4633_v27 = vadd.f32 %v2688_v30, %v4560_v11  ;;  %v897_v4 = vpop.f32.mrb[29].mxu1  ;;  %v3107_v19 = vpop.eup %3106 }
 0x492   : > { %v4636_v49 = vadd.f32 %v897_v4, %v4560_v11  ;;  %v3109_v34 = vpop.eup %3108 }
 0x493   : > { %v1012_v62 = vadd.f32 1.0, %v3109_v34  ;;  %v3111_v6 = vpop.eup %3110  ;;  %v2426_v1 = vmul.f32 -1.442695, %v4633_v27 }
 0x494   : > { %2116 = vperm.xlu0 %3008, %v3107_v19   ;;  %v2691_v9 = vpop.f32.mrb[30].mxu1  ;;  %v1014_v15 = vadd.f32 1.0, %v3111_v6  ;;  %v3113_v7 = vpop.eup %3112  ;;  %v2418_v19 = vmul.f32 -1.442695, %v4609_v51 }
 0x495   : > { %v4639_v47 = vadd.f32 %v2691_v9, %v4560_v11  ;;  %v907_v13 = vpop.f32.mrb[31].mxu1  ;;  %3118 = vrcp.f32 %v1012_v62  ;;  %v1015_v28 = vadd.f32 1.0, %v3113_v7  ;;  %v3115_v42 = vpop.eup %3114 }
 0x496   : > { %v4642_v3 = vadd.f32 %v907_v13, %v4560_v11  ;;  %v1941_v11 = vld [vmem:[%s4881_s5] sm:$0x1]  ;;  %3120 = vpow2.f32 %v2406_v0  ;;  %v1017_v2 = vadd.f32 1.0, %v3115_v42  ;;  %v3117_v32 = vpop.eup %3116 }
 0x497   : > { %3122 = vrcp.f32 %v1014_v15  ;;  %v1019_v63 = vadd.f32 1.0, %v3117_v32 }
 0x498   : > { %v1929_v20 = vpop.f32.mrb[32].mxu1  ;;  %3124 = vpow2.f32 %v2408_v59 }
 0x499   : > { %v1930_v55 = vadd.f32 %v1929_v20, %v1862_v25  ;;  %v2806_v8 = vpop.f32.mrb[33].mxu1  ;;  %3126 = vrcp.f32 %v1015_v28  ;;  %v2420_v25 = vmul.f32 -1.442695, %v4615_v61 }
 0x49a   : > { %3128 = vpow2.f32 %v2410_v56  ;;  %v2422_v8 = vmul.f32 -1.442695, %v4621_v60 }
 0x49b   : > { %2824 = vmatmul.mubr.msk.f32.vlgmr.msra.gmra.mrb[34].mxu1 %vm633_vm3, %v1930_v55  ;;  %3130 = vrcp.f32 %v1017_v2 }
 0x49c   : > { %3132 = vpow2.f32 %v2412_v57 }
 0x49d   : > { %3134 = vrcp.f32 %v1019_v63  ;;  %v2413_v63 = vmul.f32 -1.442695, %v4600_v48  ;;  %v2419_v48 = vmul.f32 -1.442695, %v4618_v21  ;;  %v2427_v21 = vmul.f32 -1.442695, %v4642_v3 }
 0x49e   : > { %3136 = vpow2.f32 %v2414_v14  ;;  %v2415_v14 = vmul.f32 -1.442695, %v4606_v43 }
 0x49f   : > { %v3119_v23 = vpop.eup %3118 }
 0x4a0   : > { %v3121_v16 = vpop.eup %3120 }
 0x4a1   : > { %v3123_v44 = vpop.eup %3122  ;;  %v1021_v22 = vadd.f32 1.0, %v3121_v16 }
 0x4a2   : > { %v3125_v58 = vpop.eup %3124 }
 0x4a3   : > { %v3127_v50 = vpop.eup %3126  ;;  %3138 = vrcp.f32 %v1021_v22  ;;  %v1023_v30 = vadd.f32 1.0, %v3125_v58 }
 0x4a4   : > { %v3129_v40 = vpop.eup %3128  ;;  %3140 = vpow2.f32 %v2416_v35 }
 0x4a5   : > { %v3131_v4 = vpop.eup %3130  ;;  %3142 = vrcp.f32 %v1023_v30  ;;  %v1025_v9 = vadd.f32 1.0, %v3129_v40  ;;  %v2421_v40 = vmul.f32 -1.442695, %v4624_v29 }
 0x4a6   : > { %v3133_v5 = vpop.eup %3132  ;;  %3144 = vpow2.f32 %v2418_v19 }
 0x4a7   : > { %v3135_v13 = vpop.eup %3134  ;;  %3146 = vrcp.f32 %v1025_v9  ;;  %v1027_v20 = vadd.f32 1.0, %v3133_v5 }
 0x4a8   : > { %v3137_v33 = vpop.eup %3136  ;;  %3148 = vpow2.f32 %v2420_v25 }
 0x4a9   : > { %3150 = vrcp.f32 %v1027_v20  ;;  %v1029_v37 = vadd.f32 1.0, %v3137_v33 }
 0x4aa   : > { %3152 = vpow2.f32 %v2422_v8 }
 0x4ab   : > { %3154 = vrcp.f32 %v1029_v37 }
 0x4ac   : > { %3156 = vpow2.f32 %v2424_v54 }
 0x4ad   : > { %v3139_v55 = vpop.eup %3138 }
 0x4ae   : > { %v3141_v51 = vpop.eup %3140 }
 0x4af   : > { %v3143_v18 = vpop.eup %3142 }
 0x4b0   : > { %v3145_v61 = vpop.eup %3144 }
 0x56e   : > { %v2011_v17 = vpop.f32.mrb[34].mxu1 }
 0x56f   : > { %v4655_v10 = vadd.f32 %v2011_v17, %v1941_v11  ;;  %v2825_v39 = vpop.f32.mrb[35].mxu1  ;;  %v1031_v11 = vadd.f32 1.0, %v3141_v51  ;;  %v3147_v17 = vpop.eup %3146 }
 0x570   : > { %v1033_v39 = vadd.f32 1.0, %v3145_v61  ;;  %v3149_v60 = vpop.eup %3148 }
 0x571   : > { %v2016_v46 = vsel %vm2015_vm4, %v4655_v10, 0.0  ;;  %3158 = vrcp.f32 %v1031_v11  ;;  %v3151_v34 = vpop.eup %3150  ;;  %v1035_v12 = vadd.f32 1.0, %v3149_v60  ;;  %v2052_v60 = vpop.permute.xlu0 %2051 }
 0x572   : > { %2017 = vadd.xlane.f32.xlu1 %v2016_v46  ;;  %3160 = vpow2.f32 %v2426_v1  ;;  %v2428_v46 = vmul.f32 -1.442695, %v4639_v47  ;;  %v3153_v26 = vpop.eup %3152 }
 0x573   : > { %3162 = vrcp.f32 %v1033_v39  ;;  %v3155_v62 = vpop.eup %3154  ;;  %v1037_v6 = vadd.f32 1.0, %v3153_v26 }
 0x574   : > { %3164 = vpow2.f32 %v2428_v46  ;;  %v3157_v0 = vpop.eup %3156 }
 0x575   : > { %3166 = vrcp.f32 %v1035_v12  ;;  %v1039_v27 = vadd.f32 1.0, %v3157_v0  ;;  %v2067_v46 = vpop.permute.xlu0 %2066 }
 0x576   : > { %3168 = vrcp.f32 %v1037_v6 }
 0x577   : > { %3170 = vrcp.f32 %v1039_v27 }
 0x579   : > { %v2077_v26 = vpop.permute.xlu0 %2076 }
 0x57b   : > { %v3159_v15 = vpop.eup %3158 }
 0x57c   : > { %v3161_v7 = vpop.eup %3160 }
 0x57d   : > { %v3163_v59 = vpop.eup %3162  ;;  %v1041_v28 = vadd.f32 1.0, %v3161_v7  ;;  %v2087_v6 = vpop.permute.xlu0 %2086 }
 0x57e   : > { %v3165_v47 = vpop.eup %3164 }
 0x57f   : > { %v3167_v42 = vpop.eup %3166  ;;  %3172 = vrcp.f32 %v1041_v28  ;;  %v1043_v56 = vadd.f32 1.0, %v3165_v47 }
 0x580   : > { %v3169_v2 = vpop.eup %3168 }
 0x581   : > { %3174 = vrcp.f32 %v1043_v56  ;;  %v3171_v32 = vpop.eup %3170 }
 0x582   : > { %3176 = vpow2.f32 %v2413_v63  ;;  %v2030_v63 = vld [vmem:[%s4882_s6] sm:$0x1] }
 0x583   : > { %2046 = vperm.xlu1 %3009, %v3119_v23   ;;  %3178 = vpow2.f32 %v2415_v14 }
 0x587   : > { %2056 = vperm.xlu1 %3009, %v3123_v44  }
 0x589   : > { %v3173_v23 = vpop.eup %3172 }
 0x58b   : > { %2061 = vperm.xlu1 %3009, %v3127_v50   ;;  %v3175_v57 = vpop.eup %3174  ;;  %v2417_v50 = vmul.f32 -1.442695, %v4612_v52  ;;  %v2425_v52 = vmul.f32 -1.442695, %v4636_v49 }
 0x58c   : > { %v3177_v30 = vpop.eup %3176 }
 0x58d   : > { %3180 = vpow2.f32 %v2417_v50  ;;  %v1028_v43 = vadd.f32 1.0, %v3177_v30 }
 0x58e   : > { %3182 = vpow2.f32 %v2419_v48 }
 0x58f   : > { %2071 = vperm.xlu1 %3009, %v3131_v4   ;;  %v3179_v4 = vpop.eup %3178  ;;  %3184 = vpow2.f32 %v2421_v40 }
 0x590   : > { %3186 = vrcp.f32 %v1028_v43  ;;  %v1030_v19 = vadd.f32 1.0, %v3179_v4 }
 0x593   : > { %2081 = vperm.xlu1 %3009, %v3135_v13  }
 0x597   : > { %2091 = vperm.xlu1 %3009, %v3139_v55   ;;  %v3181_v9 = vpop.eup %3180 }
 0x598   : > { %v1032_v5 = vadd.f32 1.0, %v3181_v9  ;;  %v3183_v13 = vpop.eup %3182 }
 0x599   : > { %v1034_v25 = vadd.f32 1.0, %v3183_v13  ;;  %v3185_v29 = vpop.eup %3184 }
 0x59a   : > { %v3187_v20 = vpop.eup %3186 }
 0x59b   : > { %2101 = vperm.xlu1 %3009, %v3143_v18  }
 0x59f   : > { %2111 = vperm.xlu1 %3009, %v3147_v17  }
 0x5a3   : > { %2121 = vperm.xlu1 %3009, %v3151_v34  }
 0x5a7   : > { %2131 = vperm.xlu1 %3009, %v3155_v62  }
 0x5ab   : > { %2141 = vperm.xlu1 %3009, %v3159_v15   ;;  %v2097_v15 = vpop.permute.xlu0 %2096 }
 0x5af   : > { %2151 = vperm.xlu1 %3009, %v3163_v59   ;;  %v2107_v7 = vpop.permute.xlu0 %2106 }
 0x5b3   : > { %2161 = vperm.xlu1 %3009, %v3167_v42   ;;  %v2117_v28 = vpop.permute.xlu0 %2116 }
 0x5b7   : > { %2171 = vperm.xlu1 %3009, %v3169_v2  }
 0x5bb   : > { %2181 = vperm.xlu1 %3009, %v3171_v32  }
 0x5bf   : > { %2191 = vperm.xlu1 %3009, %v3173_v23  }
 0x5c3   : > { %2201 = vperm.xlu1 %3009, %v3175_v57  }
 0x5ff   : > { %v2018_v16 = vpop.xlane.xlu1 %2017 }
 0x600   : > { %v2020_v44 = vmul.f32 0.0078125, %v2018_v16 }
 0x602   : > { %v4675_v22 = vsub.f32 %v4655_v10, %v2020_v44  ;;  %v2423_v10 = vmul.f32 -1.442695, %v4630_v41  ;;  %v1036_v41 = vadd.f32 1.0, %v3185_v29  ;;  %v2032_v44 = vld [vmem:[%s4883_s7] sm:$0x1] }
 0x603   : > { %v2047_v39 = vpop.permute.xlu1 %2046 }
 0x604   : > { %v2022_v58 = vmul.f32 %v4675_v22, %v4675_v22  ;;  %3188 = vpow2.f32 %v2423_v10 }
 0x605   : > { %3190 = vrcp.f32 %v1030_v19 }
 0x606   : > { %v2023_v35 = vsel %vm2015_vm4, %v2022_v58, 0.0  ;;  %3192 = vpow2.f32 %v2425_v52 }
 0x607   : > { %2024 = vadd.xlane.f32.xlu0 %v2023_v35  ;;  %3194 = vrcp.f32 %v1032_v5  ;;  %v2057_v34 = vpop.permute.xlu1 %2056 }
 0x608   : > { %3196 = vpow2.f32 %v2427_v21 }
 0x609   : > { %3198 = vrcp.f32 %v1034_v25 }
 0x60a   : > { %3200 = vrcp.f32 %v1036_v41 }
 0x60b   : > { %v2062_v12 = vpop.permute.xlu1 %2061 }
 0x60e   : > { %v3189_v33 = vpop.eup %3188 }
 0x60f   : > { %v3191_v55 = vpop.eup %3190  ;;  %v1038_v8 = vadd.f32 1.0, %v3189_v33  ;;  %v2072_v62 = vpop.permute.xlu1 %2071 }
 0x610   : > { %v3193_v49 = vpop.eup %3192 }
 0x611   : > { %v3195_v37 = vpop.eup %3194  ;;  %3202 = vrcp.f32 %v1038_v8  ;;  %v1040_v51 = vadd.f32 1.0, %v3193_v49 }
 0x612   : > { %v3197_v18 = vpop.eup %3196 }
 0x613   : > { %v3199_v3 = vpop.eup %3198  ;;  %3204 = vrcp.f32 %v1040_v51  ;;  %v1042_v54 = vadd.f32 1.0, %v3197_v18  ;;  %v2082_v0 = vpop.permute.xlu1 %2081 }
 0x614   : > { %v3201_v11 = vpop.eup %3200 }
 0x615   : > { %3206 = vrcp.f32 %v1042_v54 }
 0x617   : > { %v2092_v27 = vpop.permute.xlu1 %2091 }
 0x61b   : > { %v3203_v61 = vpop.eup %3202  ;;  %v2102_v59 = vpop.permute.xlu1 %2101 }
 0x61d   : > { %2126 = vperm.xlu0 %3008, %v3187_v20   ;;  %v3205_v17 = vpop.eup %3204 }
 0x61f   : > { %v3207_v1 = vpop.eup %3206  ;;  %v2112_v47 = vpop.permute.xlu1 %2111 }
 0x621   : > { %2136 = vperm.xlu0 %3008, %v3191_v55  }
 0x623   : > { %v2122_v32 = vpop.permute.xlu1 %2121 }
 0x625   : > { %2146 = vperm.xlu0 %3008, %v3195_v37  }
 0x627   : > { %v2132_v23 = vpop.permute.xlu1 %2131 }
 0x629   : > { %2156 = vperm.xlu0 %3008, %v3199_v3  }
 0x62b   : > { %v2142_v14 = vpop.permute.xlu1 %2141 }
 0x62d   : > { %2166 = vperm.xlu0 %3008, %v3201_v11  }
 0x62f   : > { %v2152_v30 = vpop.permute.xlu1 %2151 }
 0x631   : > { %2176 = vperm.xlu0 %3008, %v3203_v61  }
 0x633   : > { %v2162_v43 = vpop.permute.xlu1 %2161 }
 0x635   : > { %2186 = vperm.xlu0 %3008, %v3205_v17  }
 0x639   : > { %2196 = vperm.xlu0 %3008, %v3207_v1  }
 0x694   : > { %v2025_v42 = vpop.xlane.xlu0 %2024 }
 0x695   : > { %v2026_v56 = vmul.f32 0.0078125, %v2025_v42 }
 0x697   : > { %v2027_v2 = vadd.f32 1e-05, %v2026_v56  ;;  %v3249_v56 = vld [vmem:[%s3547_s30 + $0x18] sm:$0xff] }
 0x699   : > { %3208 = vrsqrt.f32 %v2027_v2 }
 0x69c   : > { %v2127_v35 = vpop.permute.xlu0 %2126 }
 0x6a0   : > { %v4693_v40 = vpop.permute.xlu0 %2136 }
 0x6a3   : > { %v3209_v57 = vpop.eup %3208 }
 0x6a4   : > { %v2029_v16 = vmul.f32 %v3209_v57, %v4675_v22  ;;  %v4695_v4 = vpop.permute.xlu0 %2146  ;;  %v2172_v22 = vpop.permute.xlu1 %2171  ;;  %v3251_v57 = vld [vmem:[%s3547_s30 + $0x28] sm:$0xff] }
 0x6a6   : > { %v2031_v58 = vmul.f32 %v2030_v63, %v2029_v16  ;;  %v3252_v16 = vld [vmem:[%s3547_s30 + $0x30] sm:$0xff] }
 0x6a8   : > { %v2033_v50 = vadd.f32 %v2032_v44, %v2031_v58  ;;  %v4697_v9 = vpop.permute.xlu0 %2156  ;;  %v2182_v52 = vpop.permute.xlu1 %2181  ;;  %v3253_v58 = vld [vmem:[%s3547_s30 + $0x80] sm:$0xff] }
 0x6aa   : > { %v2430_v48 = vmul.f32 -1.442695, %v2033_v50 }
 0x6ac   : > { %3210 = vpow2.f32 %v2430_v48  ;;  %v4699_v5 = vpop.permute.xlu0 %2166  ;;  %v2192_v21 = vpop.permute.xlu1 %2191 }
 0x6b0   : > { %v4713_v51 = vpop.permute.xlu0 %2176 }
 0x6b6   : > { %v3211_v10 = vpop.eup %3210 }
 0x6b7   : > { %v2037_v19 = vadd.f32 1.0, %v3211_v10  ;;  %v3256_v10 = vld [vmem:[%s3547_s30 + $0x48] sm:$0xff] }
 0x6b9   : > { %3212 = vrcp.f32 %v2037_v19 }
 0x6c3   : > { %v3213_v13 = vpop.eup %3212 }
 0x6c4   : > { %v4702_v25 = vrot.slane %v3213_v13, %v4218_v53  ;;  %v3258_v13 = vld [vmem:[%s3547_s30 + $0x58] sm:$0xff] }
 0x6c6   : > { %v2204_v29 = vadd.f32 %v2047_v39, %v4702_v25  ;;  %v2205_v20 = vadd.f32 %v2052_v60, %v4702_v25  ;;  %v2206_v41 = vadd.f32 %v2057_v34, %v4702_v25  ;;  %v2207_v33 = vadd.f32 %v2062_v12, %v4702_v25  ;;  %v2202_v39 = vpop.permute.xlu1 %2201 }
 0x6c7   : > { %v2208_v55 = vadd.f32 %v2067_v46, %v4702_v25  ;;  %v2209_v8 = vadd.f32 %v2072_v62, %v4702_v25  ;;  %v2210_v49 = vadd.f32 %v2077_v26, %v4702_v25  ;;  %v2211_v37 = vadd.f32 %v2082_v0, %v4702_v25 }
 0x6c8   : > { %v2212_v53 = vadd.f32 %v2087_v6, %v4702_v25  ;;  %v2213_v18 = vadd.f32 %v2092_v27, %v4702_v25  ;;  %v2214_v3 = vadd.f32 %v2097_v15, %v4702_v25  ;;  %v2215_v54 = vadd.f32 %v2102_v59, %v4702_v25  ;;  %v3246_v27 = vld [vmem:[%s3547_s30] sm:$0xff]  ;;  %v3247_v59 = vld [vmem:[%s3547_s30 + $0x8] sm:$0xff] }
 0x6c9   : > { %v2216_v11 = vadd.f32 %v2107_v7, %v4702_v25  ;;  %v2217_v61 = vadd.f32 %v2112_v47, %v4702_v25  ;;  %v2218_v17 = vadd.f32 %v2117_v28, %v4702_v25  ;;  %v2219_v1 = vadd.f32 %v2122_v32, %v4702_v25  ;;  %v3248_v47 = vld [vmem:[%s3547_s30 + $0x10] sm:$0xff]  ;;  %v3250_v32 = vld [vmem:[%s3547_s30 + $0x20] sm:$0xff] }
 0x6ca   : > { %v2221_v60 = vadd.f32 %v2132_v23, %v4702_v25  ;;  %v2223_v34 = vadd.f32 %v2142_v14, %v4702_v25  ;;  %v2225_v46 = vadd.f32 %v2152_v30, %v4702_v25  ;;  %v2227_v12 = vadd.f32 %v2162_v43, %v4702_v25  ;;  %v4747_v14 = vpop.permute.xlu0 %2186  ;;  %v3255_v30 = vld [vmem:[%s3547_s30 + $0x40] sm:$0xff] }
 0x6cb   : > { %v2229_v26 = vadd.f32 %v2172_v22, %v4702_v25  ;;  %v2231_v62 = vadd.f32 %v2182_v52, %v4702_v25  ;;  %v4734_v6 = vadd.f32 %v2192_v21, %v4702_v25  ;;  %v4737_v0 = vadd.f32 %v2202_v39, %v4702_v25  ;;  %v3257_v22 = vld [vmem:[%s3547_s30 + $0x50] sm:$0xff] }
 0x6cc   : > { %v2220_v15 = vadd.f32 %v2127_v35, %v4702_v25  ;;  %v2236_v7 = vmul.f32 %v3246_v27, %v2204_v29  ;;  %v2237_v28 = vmul.f32 %v3247_v59, %v2205_v20  ;;  %v2238_v42 = vmul.f32 %v3248_v47, %v2206_v41  ;;  %v3254_v35 = vld [vmem:[%s3547_s30 + $0x38] sm:$0xff]  ;;  %v3259_v29 = vld [vmem:[%s3547_s30 + $0x60] sm:$0xff]  ;;  %v3260_v41 = vld [vmem:[%s3547_s30 + $0x68] sm:$0xff] }
 0x6cd   : > { %v2239_v2 = vmul.f32 %v3249_v56, %v2207_v33  ;;  %v2240_v23 = vmul.f32 %v3250_v32, %v2208_v55  ;;  %v2241_v63 = vmul.f32 %v3251_v57, %v2209_v8  ;;  %v2242_v44 = vmul.f32 %v3252_v16, %v2210_v49  ;;  %v3261_v55 = vld [vmem:[%s3547_s30 + $0x70] sm:$0xff]  ;;  %v3262_v49 = vld [vmem:[%s3547_s30 + $0x78] sm:$0xff] }
 0x6ce   : > { %v2252_v50 = vmul.f32 %v3253_v58, %v2220_v15  ;;  %v2243_v48 = vmul.f32 %v3254_v35, %v2211_v37  ;;  %v2244_v43 = vmul.f32 %v3255_v30, %v2212_v53  ;;  %v2245_v19 = vmul.f32 %v3256_v10, %v2213_v18  ;;  %2268 = vst [vmem:[%s4754_s17] sm:$0xff] %v2236_v7  ;;  %v3263_v53 = vld [vmem:[%s3547_s30 + $0x88] sm:$0xff]  ;;  %v3270_v15 = vld [vmem:[%s3547_s30 + $0xc0] sm:$0xff]  ;;  %v3271_v7 = vld [vmem:[%s3547_s30 + $0xd0] sm:$0xff] }
 0x6cf   : > { %2269 = vst [vmem:[%s4754_s17 + $0x8] sm:$0xff] %v2237_v28  ;;  %2270 = vst [vmem:[%s4754_s17 + $0x10] sm:$0xff] %v2238_v42  ;;  %v2246_v52 = vmul.f32 %v3257_v22, %v2214_v3  ;;  %v2247_v21 = vmul.f32 %v3258_v13, %v2215_v54  ;;  %v2248_v20 = vmul.f32 %v3259_v29, %v2216_v11  ;;  %v3264_v3 = vld [vmem:[%s3547_s30 + $0x98] sm:$0xff]  ;;  %v3265_v11 = vld [vmem:[%s3547_s30 + $0xa8] sm:$0xff] }
 0x6d0   : > { %v2249_v33 = vmul.f32 %v3260_v41, %v2217_v61  ;;  %2271 = vst [vmem:[%s4754_s17 + $0x18] sm:$0xff] %v2239_v2  ;;  %2272 = vst [vmem:[%s4754_s17 + $0x20] sm:$0xff] %v2240_v23  ;;  %v2250_v8 = vmul.f32 %v3261_v55, %v2218_v17  ;;  %v2251_v37 = vmul.f32 %v3262_v49, %v2219_v1  ;;  %v3266_v17 = vld [vmem:[%s3547_s30 + $0xb8] sm:$0xff]  ;;  %v3272_v28 = vld [vmem:[%s3547_s30 + $0xe0] sm:$0xff] }
 0x6d1   : > { %2273 = vst [vmem:[%s4754_s17 + $0x28] sm:$0xff] %v2241_v63  ;;  %2274 = vst [vmem:[%s4754_s17 + $0x30] sm:$0xff] %v2242_v44  ;;  %v2253_v18 = vmul.f32 %v3263_v53, %v2221_v60  ;;  %v2255_v54 = vmul.f32 %v3264_v3, %v2223_v34  ;;  %v2257_v61 = vmul.f32 %v3265_v11, %v2225_v46 }
 0x6d2   : > { %2284 = vst [vmem:[%s4754_s17 + $0x80] sm:$0xff] %v2252_v50  ;;  %2275 = vst [vmem:[%s4754_s17 + $0x38] sm:$0xff] %v2243_v48  ;;  %v2259_v39 = vmul.f32 %v3266_v17, %v2227_v12  ;;  %v2261_v1 = vmul.f32 %v4485_v36, %v2229_v26  ;;  %v2263_v60 = vmul.f32 %v4508_v24, %v2231_v62  ;;  %v3267_v26 = vld [vmem:[%s3547_s30 + $0x90] sm:$0xff] }
 0x6d3   : > { %2276 = vst [vmem:[%s4754_s17 + $0x40] sm:$0xff] %v2244_v43  ;;  %2277 = vst [vmem:[%s4754_s17 + $0x48] sm:$0xff] %v2245_v19  ;;  %v2265_v34 = vmul.f32 %v4525_v38, %v4734_v6  ;;  %v2267_v46 = vmul.f32 %v4538_v31, %v4737_v0  ;;  %v2222_v12 = vadd.f32 %v4693_v40, %v4702_v25  ;;  %v3268_v6 = vld [vmem:[%s3547_s30 + $0xa0] sm:$0xff]  ;;  %v3269_v0 = vld [vmem:[%s3547_s30 + $0xb0] sm:$0xff]  ;;  %s4835_s30 = scalar_lea.sflag [#allocation4], %s419_s23 }
 0x6d4   : > { %2278 = vst [vmem:[%s4754_s17 + $0x50] sm:$0xff] %v2246_v52  ;;  %2279 = vst [vmem:[%s4754_s17 + $0x58] sm:$0xff] %v2247_v21  ;;  %v2224_v36 = vadd.f32 %v4695_v4, %v4702_v25  ;;  %v2226_v24 = vadd.f32 %v4697_v9, %v4702_v25  ;;  %v2228_v38 = vadd.f32 %v4699_v5, %v4702_v25  ;;  %v2197_v4 = vpop.permute.xlu0 %2196 }
 0x6d5   : > { %2280 = vst [vmem:[%s4754_s17 + $0x60] sm:$0xff] %v2248_v20  ;;  %2281 = vst [vmem:[%s4754_s17 + $0x68] sm:$0xff] %v2249_v33  ;;  %v2230_v31 = vadd.f32 %v4713_v51, %v4702_v25  ;;  %v2232_v40 = vadd.f32 %v4747_v14, %v4702_v25  ;;  %v2254_v62 = vmul.f32 %v3267_v26, %v2222_v12 }
 0x6d6   : > { %2282 = vst [vmem:[%s4754_s17 + $0x70] sm:$0xff] %v2250_v8  ;;  %2283 = vst [vmem:[%s4754_s17 + $0x78] sm:$0xff] %v2251_v37  ;;  %v2256_v9 = vmul.f32 %v3268_v6, %v2224_v36  ;;  %v2234_v5 = vadd.f32 %v2197_v4, %v4702_v25  ;;  %v2258_v51 = vmul.f32 %v3269_v0, %v2226_v24 }
 0x6d7   : > { %2285 = vst [vmem:[%s4754_s17 + $0x88] sm:$0xff] %v2253_v18  ;;  %2287 = vst [vmem:[%s4754_s17 + $0x98] sm:$0xff] %v2255_v54  ;;  %v2260_v27 = vmul.f32 %v3270_v15, %v2228_v38  ;;  %v2262_v59 = vmul.f32 %v3271_v7, %v2230_v31  ;;  %v2264_v47 = vmul.f32 %v3272_v28, %v2232_v40 }
 0x6d8   : > { %2289 = vst [vmem:[%s4754_s17 + $0xa8] sm:$0xff] %v2257_v61  ;;  %2291 = vst [vmem:[%s4754_s17 + $0xb8] sm:$0xff] %v2259_v39  ;;  %v2266_v25 = vmul.f32 %v4531_v45, %v2234_v5 }
 0x6d9   : > { %2293 = vst [vmem:[%s4754_s17 + $0xc8] sm:$0xff] %v2261_v1  ;;  %2295 = vst [vmem:[%s4754_s17 + $0xd8] sm:$0xff] %v2263_v60 }
 0x6da   : > { %2297 = vst [vmem:[%s4754_s17 + $0xe8] sm:$0xff] %v2265_v34  ;;  %2299 = vst [vmem:[%s4754_s17 + $0xf8] sm:$0xff] %v2267_v46 }
 0x6db   : > { %2286 = vst [vmem:[%s4754_s17 + $0x90] sm:$0xff] %v2254_v62  ;;  %2288 = vst [vmem:[%s4754_s17 + $0xa0] sm:$0xff] %v2256_v9 }
 0x6dc   : > { %2290 = vst [vmem:[%s4754_s17 + $0xb0] sm:$0xff] %v2258_v51  ;;  %2292 = vst [vmem:[%s4754_s17 + $0xc0] sm:$0xff] %v2260_v27 }
 0x6dd   : > { %2294 = vst [vmem:[%s4754_s17 + $0xd0] sm:$0xff] %v2262_v59  ;;  %2296 = vst [vmem:[%s4754_s17 + $0xe0] sm:$0xff] %v2264_v47 }
 0x6de   : > { %2298 = vst [vmem:[%s4754_s17 + $0xf0] sm:$0xff] %v2266_v25 }
 0x6df   : > { %3314 = shalt.err (!%p3311_p7)
}
 0x6e0   : > { %s3315_s23 = scalar_lea.hbm %s4821_s16, 4096  ;;  %s3319_s18 = scalar_lea.hbm %s4888_s12, 8192 }
 0x6e1   : > { %p3316_p8 = scmp.ne.s32.totalorder %s4821_s16, %s3315_s23  ;;  %p3320_p1 = scmp.lt.u32.totalorder %s4821_s16, %s4888_s12 }
 0x6e2   : > { %p3321_p0 = scmp.lt.u32.totalorder %s3319_s18, %s3315_s23  ;;  %p3323_p6 = scmp.lt.u32.totalorder %s3315_s23, %s4821_s16 }
 0x6e3   : > { %p3317_p11 = pnand %p3316_p8, %p4904_p9 }
 0x6e4   : > { %p3322_p5 = por %p3321_p0, %p3320_p1 }
 0x6e5   : > { %p3318_p13 = pneg %p3317_p11 }
 0x6e6   : > { %p3324_p10 = por %p3323_p6, %p3322_p5 }
 0x6e8   : > { %p3325_p12 = pnand %p3324_p10, %p3318_p13 }
 0x6ea   : > { %3328 = shalt.err (!%p3325_p12)
}
 0x6eb   : > { %s3377_s19 = smov 128   ;;  %s3378_s20 = smov 8  }
 0x6ec   : > { %2954 = dma.vmem_to_hbm [thread:$0]  (%p4904_p9), %s4823_s4, 4096, %s4821_s16, %s4835_s30, %s3377_s19, %s3377_s19, %s3378_s20  }
 0x6ed PF: > { %p2966_p2 = scmp.ge.s32.totalorder %s3367_s24, 2  ;;  %s2329_s28 = sand.u32 1, %s3355_s21  }
 0x6ee   : > { %p4905_p3 = scmp.ne.s32.totalorder %s4897_s14, 0  ;;  %s2330_s29 = scalar_lea.sflag [#allocation4], %s2329_s28 }
 0x6f0   : > { %p2961_p4 = pnand %p2966_p2, %p4905_p3 }
 0x6f2   : > { %3350 = dma.done.wait (!%p2961_p4), %s2330_s29, 4096  }
 0x6f3   : > { %3352 = vsyncadd (!%p2961_p4), %s2330_s29, 4294963200  ;;  %s4906_s23 = sld [smem:[#allocation8_spill]]  ;;  %s4907_s15 = sld [smem:[#allocation9_spill]] }
 0x6f4   : > { %p23_p7 = scmp.ge.s32.totalorder %s3469_s27, 4   ;;  %s4908_s21 = smov %s3359_s22 }
 0x6f5   : > { %s4911_s24 = smov %s3469_s27 }
 0x6f6   :  { %25 = sbr.rel (!%p23_p7) target bundleno = 6 (0x6), region = 108 }
 0x6f9   : > { %s4909_s22 = smov %s4906_s23  ;;  %s4910_s23 = smov %s4907_s15 }
 0x6fd   :  { %2335 = vsyncpa [#allocation3], 1 }
 0x6fe   :  { %2337 = vsyncpa [#allocation3 + $0x1], 1 }
 0x6ff   :  { %2338 = vsyncpa [#allocation4], 1 }
 0x700   :  { %2340 = vsyncpa [#allocation4 + $0x1], 1 }

</bundles_post_ra>
